<compile_context>
chip_gen: v7x
topology: tpu7x:2x2x1
jax: 0.10.0
libtpu: 0.0.40
codegen_flags: <defaults>
</compile_context>

<pallas_src>
import math
import functools

import jax
import jax.numpy as jnp
from jax.experimental import pallas as pl
from jax.experimental.pallas import tpu as pltpu


# ---------------------------------------------------------------------------
# small math helpers (usable both inside the kernel and in the reference)
# ---------------------------------------------------------------------------

_LN_EPS = 1e-5  # torch.nn.LayerNorm default
_SQRT_2_OVER_PI = 0.7978845608028654
_NEG_INF = -1e30


def _layer_norm(x, gamma, beta):
    mu = jnp.mean(x, axis=-1, keepdims=True)
    xc = x - mu
    var = jnp.mean(xc * xc, axis=-1, keepdims=True)
    return xc * jax.lax.rsqrt(var + _LN_EPS) * gamma + beta


def _gelu_tanh(x):
    return 0.5 * x * (1.0 + jnp.tanh(_SQRT_2_OVER_PI * (x + 0.044715 * x * x * x)))


def _round_up(n, m):
    return ((n + m - 1) // m) * m


@functools.lru_cache(maxsize=1)
def _vmem_capacity_bytes():
    """Physical VMEM bytes of the local TPU, or None if unavailable."""
    try:
        info = pltpu.get_tpu_info()
        cap = getattr(info, "vmem_capacity_bytes", None)
        return int(cap) if cap else None
    except Exception:
        return None


# ---------------------------------------------------------------------------
# fused CLIP layer kernel
# ---------------------------------------------------------------------------

def _clip_layer_kernel(x_ref, ln1g_ref, ln1b_ref,
                       wq_ref, bq_ref, wk_ref, bk_ref, wv_ref, bv_ref,
                       wo_ref, bo_ref,
                       ln2g_ref, ln2b_ref, w1_ref, b1_ref, w2_ref, b2_ref,
                       o_ref,
                       q_scr, k_scr, v_scr, attn_scr,
                       *, heads: int, head_dim: int, q_tile: int, seq_len: int):
    f32 = jnp.float32
    bf16 = jnp.bfloat16

    qi = pl.program_id(1)
    s_pad = k_scr.shape[0]          # (padded) sequence length

    # --- once per batch element: LayerNorm1 + full-width Q/K/V projections ---
    # q axis is the innermost "arbitrary" grid axis, so the scratches persist
    # across all query tiles of this batch element.  The 1/sqrt(D) attention
    # scale is pre-folded into wq/bq at weight-prep time.
    @pl.when(qi == 0)
    def _project_qkv():
        h1 = _layer_norm(x_ref[0], ln1g_ref[...], ln1b_ref[...]).astype(bf16)
        q_scr[...] = (jnp.dot(h1, wq_ref[...], preferred_element_type=f32)
                      + bq_ref[...]).astype(bf16)
        k_scr[...] = (jnp.dot(h1, wk_ref[...], preferred_element_type=f32)
                      + bk_ref[...]).astype(bf16)
        v_scr[...] = (jnp.dot(h1, wv_ref[...], preferred_element_type=f32)
                      + bv_ref[...]).astype(bf16)

    row0 = pl.multiple_of(qi * q_tile, q_tile)      # sublane-aligned tile start
    x_tile = x_ref[0, pl.ds(row0, q_tile), :]       # (TQ, E) f32 (residual input)

    # Static key-padding mask: only materialized when the sequence was padded.
    if seq_len < s_pad:
        key_valid = jax.lax.broadcasted_iota(jnp.int32, (1, s_pad), 1) < seq_len
    else:
        key_valid = None

    nt_dims = (((1,), (1,)), ((), ()))   # contract trailing dims of Q and K (no K transpose)

    for h in range(heads):
        lo = h * head_dim   # static lane offset of this head
        q_h = q_scr[pl.ds(row0, q_tile), pl.ds(lo, head_dim)]   # (TQ, D) bf16
        k_h = k_scr[:, pl.ds(lo, head_dim)]                     # (S,  D) bf16
        v_h = v_scr[:, pl.ds(lo, head_dim)]                     # (S,  D) bf16

        s = jax.lax.dot_general(q_h, k_h, nt_dims,
                                preferred_element_type=f32)     # (TQ, S)
        if key_valid is not None:
            s = jnp.where(key_valid, s, _NEG_INF)

        # Numerically-stable softmax with DEFERRED normalization: normalize the
        # (TQ, D) P@V product instead of the (TQ, S) probability matrix.
        s = s - jnp.max(s, axis=-1, keepdims=True)
        p = jnp.exp(s)
        denom = jnp.sum(p, axis=-1, keepdims=True)              # f32 accumulation
        o_h = jnp.dot(p.astype(bf16), v_h, preferred_element_type=f32)   # (TQ, D)
        o_h = o_h * pl.reciprocal(denom, approx=True)           # EUP slot

        # Pack this head's output at its lane offset -> one full-E Wo matmul.
        attn_scr[:, pl.ds(lo, head_dim)] = o_h.astype(bf16)

    # Single full-width output projection (K = E contraction depth).
    attn = jnp.dot(attn_scr[...], wo_ref[...], preferred_element_type=f32) + bo_ref[...]
    y = x_tile + attn                                            # residual 1

    # MLP branch.
    h2 = _layer_norm(y, ln2g_ref[...], ln2b_ref[...]).astype(bf16)
    m = jnp.dot(h2, w1_ref[...], preferred_element_type=f32) + b1_ref[...]
    m = _gelu_tanh(m)
    z = jnp.dot(m.astype(bf16), w2_ref[...], preferred_element_type=f32) + b2_ref[...]

    o_ref[0] = (y + z).astype(o_ref.dtype)                       # residual 2


# ---------------------------------------------------------------------------
# one-time weight prep (hoisted out of the forward pass)
# ---------------------------------------------------------------------------

def prepare_layer_params(p, heads):
    """Pre-transpose / pre-cast one CLIPLayer's PyTorch-convention params.

    Done once at model load; the forward pass then sees ready-to-use arrays
    (bf16 MXU weights, f32 biases / LayerNorm params, attention scale folded
    into Wq / bq).
    """
    E = p["q_w"].shape[0]
    I = p["fc1_w"].shape[0]
    D = E // heads
    bf16 = jnp.bfloat16
    f32 = jnp.float32
    scale = 1.0 / math.sqrt(D)

    return {
        "ln1_g": p["ln1_g"].reshape(1, E).astype(f32),
        "ln1_b": p["ln1_b"].reshape(1, E).astype(f32),
        "wq": (p["q_w"].T * scale).astype(bf16),   # (E, E), scale folded
        "bq": (p["q_b"] * scale).reshape(1, E).astype(f32),
        "wk": p["k_w"].T.astype(bf16),             # (E, E)
        "bk": p["k_b"].reshape(1, E).astype(f32),
        "wv": p["v_w"].T.astype(bf16),             # (E, E)
        "bv": p["v_b"].reshape(1, E).astype(f32),
        "wo": p["o_w"].T.astype(bf16),             # (E, E)
        "bo": p["o_b"].reshape(1, E).astype(f32),
        "ln2_g": p["ln2_g"].reshape(1, E).astype(f32),
        "ln2_b": p["ln2_b"].reshape(1, E).astype(f32),
        "w1": p["fc1_w"].T.astype(bf16),           # (E, I)
        "b1": p["fc1_b"].reshape(1, I).astype(f32),
        "w2": p["fc2_w"].T.astype(bf16),           # (I, E)
        "b2": p["fc2_b"].reshape(1, E).astype(f32),
    }


# ---------------------------------------------------------------------------
# wrapper
# ---------------------------------------------------------------------------

def clip_layer(x, w, heads):
    """One CLIPLayer forward. x: (B, S, E) f32. w: prepared params."""
    B, S, E = x.shape
    assert E % heads == 0
    D = E // heads
    I = w["w1"].shape[1]

    # Generation-aware VMEM budget: ~48 MiB on v7x (64 MiB phys), ~96 MiB on
    # v5e/v6e (128 MiB phys); compiler default if the query fails.
    cap = _vmem_capacity_bytes()
    vmem_limit = int(cap * 3 // 4) if cap else None
    big_vmem = bool(cap and cap >= 100 * 1024 * 1024)

    # Query tile: 256 on big-VMEM chips when it divides S, else 128; short
    # sequences get a single sublane-aligned tile.  Only QUERY rows are padded
    # (zero rows); padded KEY columns are masked inside the kernel.
    if S > 128:
        tq = 256 if (big_vmem and S % 256 == 0) else 128
    else:
        tq = _round_up(S, 8)
    s_pad = _round_up(S, tq)

    x_in = x if s_pad == S else jnp.pad(x, ((0, 0), (0, s_pad - S), (0, 0)))

    grid = (B, s_pad // tq)

    kernel = functools.partial(_clip_layer_kernel, heads=heads, head_dim=D,
                               q_tile=tq, seq_len=S)

    def inv(shape):  # grid-invariant operand (weights / biases / LN params)
        return pl.BlockSpec(shape, lambda b, q: (0,) * len(shape))

    out = pl.pallas_call(
        kernel,
        out_shape=jax.ShapeDtypeStruct((B, s_pad, E), x.dtype),
        grid_spec=pltpu.PrefetchScalarGridSpec(
            num_scalar_prefetch=0,
            grid=grid,
            in_specs=[
                # Full (padded) sequence for this batch element; the index map
                # is constant over q, so it is only DMA'd when b changes.
                pl.BlockSpec((1, s_pad, E), lambda b, q: (b, 0, 0)),
                inv((1, E)), inv((1, E)),              # ln1 gamma / beta
                inv((E, E)), inv((1, E)),              # Wq (scale folded), bq
                inv((E, E)), inv((1, E)),              # Wk, bk
                inv((E, E)), inv((1, E)),              # Wv, bv
                inv((E, E)), inv((1, E)),              # Wo, bo
                inv((1, E)), inv((1, E)),              # ln2 gamma / beta
                inv((E, I)), inv((1, I)),              # fc1
                inv((I, E)), inv((1, E)),              # fc2
            ],
            out_specs=pl.BlockSpec((1, tq, E), lambda b, q: (b, q, 0)),
            scratch_shapes=[
                pltpu.VMEM((s_pad, E), jnp.bfloat16),   # Q (per batch element)
                pltpu.VMEM((s_pad, E), jnp.bfloat16),   # K
                pltpu.VMEM((s_pad, E), jnp.bfloat16),   # V
                pltpu.VMEM((tq, E), jnp.bfloat16),      # packed per-head outputs
            ],
        ),
        compiler_params=pltpu.CompilerParams(
            dimension_semantics=("parallel", "arbitrary"),
            vmem_limit_bytes=vmem_limit,
        ),
    )(x_in, w["ln1_g"], w["ln1_b"], w["wq"], w["bq"], w["wk"], w["bk"],
      w["wv"], w["bv"], w["wo"], w["bo"], w["ln2_g"], w["ln2_b"],
      w["w1"], w["b1"], w["w2"], w["b2"])

    return out if s_pad == S else out[:, :S, :]


@functools.partial(jax.jit, static_argnums=(2, 3))
def clip_encoder(x, prepared_layers, heads, intermediate_output=None):
    """CLIPEncoder.forward (mask=None path). Returns (x, intermediate)."""
    n = len(prepared_layers)
    if intermediate_output is not None and intermediate_output < 0:
        intermediate_output = n + intermediate_output
    intermediate = None
    for i, w in enumerate(prepared_layers):
        x = clip_layer(x, w, heads)
        if i == intermediate_output:
            intermediate = x   # .clone() not needed: JAX arrays are immutable
    return x, intermediate


# ---------------------------------------------------------------------------
# pure-JAX reference mirroring the same mixed-precision policy
# (bf16 matmul operands, f32 accumulation), mask=None path
# ---------------------------------------------------------------------------

def _bf16_round(a):
    return a.astype(jnp.bfloat16).astype(jnp.float32)


def _reference_layer(x, p, heads):
    B, S, E = x.shape
    D = E // heads
    h1 = _layer_norm(x, p["ln1_g"], p["ln1_b"])
    h1q = _bf16_round(h1)
    q = jnp.einsum("bse,fe->bsf", h1q, _bf16_round(p["q_w"])) + p["q_b"]
    k = jnp.einsum("bse,fe->bsf", h1q, _bf16_round(p["k_w"])) + p["k_b"]
    v = jnp.einsum("bse,fe->bsf", h1q, _bf16_round(p["v_w"])) + p["v_b"]

    def split(t):  # (B, S, E) -> (B, H, S, D)
        return t.reshape(B, S, heads, D).transpose(0, 2, 1, 3)

    qh, kh, vh = split(q), split(k), split(v)
    s = jnp.einsum("bhqd,bhkd->bhqk", _bf16_round(qh), _bf16_round(kh))
    s = s * (1.0 / math.sqrt(D))
    pr = jax.nn.softmax(s, axis=-1)
    o = jnp.einsum("bhqk,bhkd->bhqd", _bf16_round(pr), _bf16_round(vh))
    o = o.transpose(0, 2, 1, 3).reshape(B, S, E)
    attn = jnp.einsum("bse,fe->bsf", _bf16_round(o), _bf16_round(p["o_w"])) + p["o_b"]
    y = x + attn

    h2 = _bf16_round(_layer_norm(y, p["ln2_g"], p["ln2_b"]))
    m = jnp.einsum("bse,fe->bsf", h2, _bf16_round(p["fc1_w"])) + p["fc1_b"]
    g = _gelu_tanh(m)
    z = jnp.einsum("bsi,ei->bse", _bf16_round(g), _bf16_round(p["fc2_w"])) + p["fc2_b"]
    return y + z


def _reference_encoder(x, layer_params, heads, intermediate_output=None):
    n = len(layer_params)
    if intermediate_output is not None and intermediate_output < 0:
        intermediate_output = n + intermediate_output
    inter = None
    for i, p in enumerate(layer_params):
        x = _reference_layer(x, p, heads)
        if i == intermediate_output:
            inter = x
    return x, inter


# ---------------------------------------------------------------------------
# demo / self-test
# ---------------------------------------------------------------------------

def _make_layer_params(key, E, I):
    ks = jax.random.split(key, 16)
    f32 = jnp.float32
    s_e = 1.0 / math.sqrt(E)
    s_i = 1.0 / math.sqrt(I)
    return {
        "ln1_g": 1.0 + 0.05 * jax.random.normal(ks[0], (E,), f32),
        "ln1_b": 0.05 * jax.random.normal(ks[1], (E,), f32),
        "q_w": s_e * jax.random.normal(ks[2], (E, E), f32),
        "q_b": 0.02 * jax.random.normal(ks[3], (E,), f32),
        "k_w": s_e * jax.random.normal(ks[4], (E, E), f32),
        "k_b": 0.02 * jax.random.normal(ks[5], (E,), f32),
        "v_w": s_e * jax.random.normal(ks[6], (E, E), f32),
        "v_b": 0.02 * jax.random.normal(ks[7], (E,), f32),
        "o_w": s_e * jax.random.normal(ks[8], (E, E), f32),
        "o_b": 0.02 * jax.random.normal(ks[9], (E,), f32),
        "ln2_g": 1.0 + 0.05 * jax.random.normal(ks[10], (E,), f32),
        "ln2_b": 0.05 * jax.random.normal(ks[11], (E,), f32),
        "fc1_w": s_e * jax.random.normal(ks[12], (I, E), f32),
        "fc1_b": 0.02 * jax.random.normal(ks[13], (I,), f32),
        "fc2_w": s_i * jax.random.normal(ks[14], (E, I), f32),
        "fc2_b": 0.02 * jax.random.normal(ks[15], (E,), f32),
    }


if __name__ == "__main__":
    B, S, E, H, L = 2, 8, 32, 4, 2
    I = 4 * E

    key = jax.random.PRNGKey(0)
    k_x, *layer_keys = jax.random.split(key, L + 1)
    layers = [_make_layer_params(k, E, I) for k in layer_keys]
    x = jax.random.normal(k_x, (B, S, E), jnp.float32)

    # One-time weight prep (layout / bf16 cast) -- hoisted out of the forward.
    prepared = [prepare_layer_params(p, H) for p in layers]

    out, inter = clip_encoder(x, prepared, H, -2)
    out = jax.block_until_ready(out)
    inter = jax.block_until_ready(inter)

    ref_out, ref_inter = _reference_encoder(x, layers, H, intermediate_output=-2)

    assert out.shape == (B, S, E)
    assert inter is not None and inter.shape == (B, S, E)
    assert jnp.allclose(out, ref_out, atol=2e-2, rtol=2e-2), "encoder output mismatch"
    assert jnp.allclose(inter, ref_inter, atol=2e-2, rtol=2e-2), "intermediate mismatch"

    print("KERNEL_OK")
</pallas_src>

<mosaic_0001>
module attributes {stable_mosaic.version = 11 : i64} {
  func.func @_clip_layer_kernel(%arg0: i32, %arg1: i32, %arg2: memref<1x8x32xf32, #tpu.memory_space<vmem>>, %arg3: memref<1x32xf32, #tpu.memory_space<vmem>>, %arg4: memref<1x32xf32, #tpu.memory_space<vmem>>, %arg5: memref<32x32xbf16, #tpu.memory_space<vmem>>, %arg6: memref<1x32xf32, #tpu.memory_space<vmem>>, %arg7: memref<32x32xbf16, #tpu.memory_space<vmem>>, %arg8: memref<1x32xf32, #tpu.memory_space<vmem>>, %arg9: memref<32x32xbf16, #tpu.memory_space<vmem>>, %arg10: memref<1x32xf32, #tpu.memory_space<vmem>>, %arg11: memref<32x32xbf16, #tpu.memory_space<vmem>>, %arg12: memref<1x32xf32, #tpu.memory_space<vmem>>, %arg13: memref<1x32xf32, #tpu.memory_space<vmem>>, %arg14: memref<1x32xf32, #tpu.memory_space<vmem>>, %arg15: memref<32x128xbf16, #tpu.memory_space<vmem>>, %arg16: memref<1x128xf32, #tpu.memory_space<vmem>>, %arg17: memref<128x32xbf16, #tpu.memory_space<vmem>>, %arg18: memref<1x32xf32, #tpu.memory_space<vmem>>, %arg19: memref<1x8x32xf32, #tpu.memory_space<vmem>>, %arg20: memref<8x32xbf16, #tpu.memory_space<vmem>>, %arg21: memref<8x32xbf16, #tpu.memory_space<vmem>>, %arg22: memref<8x32xbf16, #tpu.memory_space<vmem>>, %arg23: memref<8x32xbf16, #tpu.memory_space<vmem>>) attributes {dimension_semantics = [#tpu.dimension_semantics<parallel>, #tpu.dimension_semantics<arbitrary>], iteration_bounds = array<i64: 2, 1>, scalar_prefetch = 0 : i64, scratch_operands = 4 : i64, tpu.core_type = #tpu.core_type<tc>, window_params = [{transform_indices = @transform_0, window_bounds = array<i64: 1, 8, 32>}, {pipeline_mode = #tpu.pipeline_mode<synchronous>, transform_indices = @transform_1, window_bounds = array<i64: 1, 32>}, {pipeline_mode = #tpu.pipeline_mode<synchronous>, transform_indices = @transform_2, window_bounds = array<i64: 1, 32>}, {pipeline_mode = #tpu.pipeline_mode<synchronous>, transform_indices = @transform_3, window_bounds = array<i64: 32, 32>}, {pipeline_mode = #tpu.pipeline_mode<synchronous>, transform_indices = @transform_4, window_bounds = array<i64: 1, 32>}, {pipeline_mode = #tpu.pipeline_mode<synchronous>, transform_indices = @transform_5, window_bounds = array<i64: 32, 32>}, {pipeline_mode = #tpu.pipeline_mode<synchronous>, transform_indices = @transform_6, window_bounds = array<i64: 1, 32>}, {pipeline_mode = #tpu.pipeline_mode<synchronous>, transform_indices = @transform_7, window_bounds = array<i64: 32, 32>}, {pipeline_mode = #tpu.pipeline_mode<synchronous>, transform_indices = @transform_8, window_bounds = array<i64: 1, 32>}, {pipeline_mode = #tpu.pipeline_mode<synchronous>, transform_indices = @transform_9, window_bounds = array<i64: 32, 32>}, {pipeline_mode = #tpu.pipeline_mode<synchronous>, transform_indices = @transform_10, window_bounds = array<i64: 1, 32>}, {pipeline_mode = #tpu.pipeline_mode<synchronous>, transform_indices = @transform_11, window_bounds = array<i64: 1, 32>}, {pipeline_mode = #tpu.pipeline_mode<synchronous>, transform_indices = @transform_12, window_bounds = array<i64: 1, 32>}, {pipeline_mode = #tpu.pipeline_mode<synchronous>, transform_indices = @transform_13, window_bounds = array<i64: 32, 128>}, {pipeline_mode = #tpu.pipeline_mode<synchronous>, transform_indices = @transform_14, window_bounds = array<i64: 1, 128>}, {pipeline_mode = #tpu.pipeline_mode<synchronous>, transform_indices = @transform_15, window_bounds = array<i64: 128, 32>}, {pipeline_mode = #tpu.pipeline_mode<synchronous>, transform_indices = @transform_16, window_bounds = array<i64: 1, 32>}, {transform_indices = @transform_17, window_bounds = array<i64: 1, 8, 32>}]} {
    %c0_i32 = arith.constant 0 : i32
    %0 = arith.cmpi eq, %arg1, %c0_i32 : i32
    %1 = arith.extui %0 : i1 to i32
    %c0_i32_0 = arith.constant 0 : i32
    %2 = arith.cmpi ne, %1, %c0_i32_0 : i32
    scf.if %2 {
      %c0_75 = arith.constant 0 : index
      %c0_76 = arith.constant 0 : index
      %c0_77 = arith.constant 0 : index
      %142 = vector.load %arg2[%c0_75, %c0_76, %c0_77] : memref<1x8x32xf32, #tpu.memory_space<vmem>>, vector<1x8x32xf32>
      %143 = vector.shape_cast %142 : vector<1x8x32xf32> to vector<8x32xf32>
      %c0_78 = arith.constant 0 : index
      %c0_79 = arith.constant 0 : index
      %144 = vector.load %arg3[%c0_78, %c0_79] : memref<1x32xf32, #tpu.memory_space<vmem>>, vector<1x32xf32>
      %c0_80 = arith.constant 0 : index
      %c0_81 = arith.constant 0 : index
      %145 = vector.load %arg4[%c0_80, %c0_81] : memref<1x32xf32, #tpu.memory_space<vmem>>, vector<1x32xf32>
      %cst_82 = arith.constant dense<0.000000e+00> : vector<8xf32>
      %146 = vector.multi_reduction <add>, %143, %cst_82 [1] : vector<8x32xf32> to vector<8xf32>
      %147 = vector.shape_cast %146 : vector<8xf32> to vector<8x1xf32>
      %cst_83 = arith.constant 3.200000e+01 : f32
      %148 = vector.broadcast %cst_83 : f32 to vector<8x1xf32>
      %149 = arith.divf %147, %148 : vector<8x1xf32>
      %150 = vector.broadcast %149 : vector<8x1xf32> to vector<8x32xf32>
      %151 = arith.subf %143, %150 : vector<8x32xf32>
      %152 = arith.mulf %151, %151 : vector<8x32xf32>
      %cst_84 = arith.constant dense<0.000000e+00> : vector<8xf32>
      %153 = vector.multi_reduction <add>, %152, %cst_84 [1] : vector<8x32xf32> to vector<8xf32>
      %154 = vector.shape_cast %153 : vector<8xf32> to vector<8x1xf32>
      %cst_85 = arith.constant 3.200000e+01 : f32
      %155 = vector.broadcast %cst_85 : f32 to vector<8x1xf32>
      %156 = arith.divf %154, %155 : vector<8x1xf32>
      %cst_86 = arith.constant 9.99999974E-6 : f32
      %157 = vector.broadcast %cst_86 : f32 to vector<8x1xf32>
      %158 = arith.addf %156, %157 : vector<8x1xf32>
      %159 = math.rsqrt %158 : vector<8x1xf32>
      %160 = vector.broadcast %159 : vector<8x1xf32> to vector<8x32xf32>
      %161 = arith.mulf %151, %160 : vector<8x32xf32>
      %162 = vector.broadcast %144 : vector<1x32xf32> to vector<8x32xf32>
      %163 = arith.mulf %161, %162 : vector<8x32xf32>
      %164 = vector.broadcast %145 : vector<1x32xf32> to vector<8x32xf32>
      %165 = arith.addf %163, %164 : vector<8x32xf32>
      %166 = arith.truncf %165 : vector<8x32xf32> to vector<8x32xbf16>
      %c0_87 = arith.constant 0 : index
      %c0_88 = arith.constant 0 : index
      %167 = vector.load %arg5[%c0_87, %c0_88] : memref<32x32xbf16, #tpu.memory_space<vmem>>, vector<32x32xbf16>
      %cst_89 = arith.constant dense<0.000000e+00> : vector<8x32xf32>
      %168 = tpu.matmul %166, %167, %cst_89 {dimension_numbers = #tpu.dot_dimension_numbers<[1], [0], [0], [1], [0, 0, 1, 1], [], []>} : vector<8x32xbf16>, vector<32x32xbf16>, vector<8x32xf32> -> vector<8x32xf32>
      %c0_90 = arith.constant 0 : index
      %c0_91 = arith.constant 0 : index
      %169 = vector.load %arg6[%c0_90, %c0_91] : memref<1x32xf32, #tpu.memory_space<vmem>>, vector<1x32xf32>
      %170 = vector.broadcast %169 : vector<1x32xf32> to vector<8x32xf32>
      %171 = arith.addf %168, %170 : vector<8x32xf32>
      %172 = arith.truncf %171 : vector<8x32xf32> to vector<8x32xbf16>
      %c0_92 = arith.constant 0 : index
      %c0_93 = arith.constant 0 : index
      %173 = vector.load %arg20[%c0_92, %c0_93] : memref<8x32xbf16, #tpu.memory_space<vmem>>, vector<8x32xbf16>
      tpu.vector_store %arg20[%c0_92, %c0_93], %172 {strides = array<i32>} : memref<8x32xbf16, #tpu.memory_space<vmem>>, vector<8x32xbf16>,
      %c0_94 = arith.constant 0 : index
      %c0_95 = arith.constant 0 : index
      %174 = vector.load %arg7[%c0_94, %c0_95] : memref<32x32xbf16, #tpu.memory_space<vmem>>, vector<32x32xbf16>
      %cst_96 = arith.constant dense<0.000000e+00> : vector<8x32xf32>
      %175 = tpu.matmul %166, %174, %cst_96 {dimension_numbers = #tpu.dot_dimension_numbers<[1], [0], [0], [1], [0, 0, 1, 1], [], []>} : vector<8x32xbf16>, vector<32x32xbf16>, vector<8x32xf32> -> vector<8x32xf32>
      %c0_97 = arith.constant 0 : index
      %c0_98 = arith.constant 0 : index
      %176 = vector.load %arg8[%c0_97, %c0_98] : memref<1x32xf32, #tpu.memory_space<vmem>>, vector<1x32xf32>
      %177 = vector.broadcast %176 : vector<1x32xf32> to vector<8x32xf32>
      %178 = arith.addf %175, %177 : vector<8x32xf32>
      %179 = arith.truncf %178 : vector<8x32xf32> to vector<8x32xbf16>
      %c0_99 = arith.constant 0 : index
      %c0_100 = arith.constant 0 : index
      %180 = vector.load %arg21[%c0_99, %c0_100] : memref<8x32xbf16, #tpu.memory_space<vmem>>, vector<8x32xbf16>
      tpu.vector_store %arg21[%c0_99, %c0_100], %179 {strides = array<i32>} : memref<8x32xbf16, #tpu.memory_space<vmem>>, vector<8x32xbf16>,
      %c0_101 = arith.constant 0 : index
      %c0_102 = arith.constant 0 : index
      %181 = vector.load %arg9[%c0_101, %c0_102] : memref<32x32xbf16, #tpu.memory_space<vmem>>, vector<32x32xbf16>
      %cst_103 = arith.constant dense<0.000000e+00> : vector<8x32xf32>
      %182 = tpu.matmul %166, %181, %cst_103 {dimension_numbers = #tpu.dot_dimension_numbers<[1], [0], [0], [1], [0, 0, 1, 1], [], []>} : vector<8x32xbf16>, vector<32x32xbf16>, vector<8x32xf32> -> vector<8x32xf32>
      %c0_104 = arith.constant 0 : index
      %c0_105 = arith.constant 0 : index
      %183 = vector.load %arg10[%c0_104, %c0_105] : memref<1x32xf32, #tpu.memory_space<vmem>>, vector<1x32xf32>
      %184 = vector.broadcast %183 : vector<1x32xf32> to vector<8x32xf32>
      %185 = arith.addf %182, %184 : vector<8x32xf32>
      %186 = arith.truncf %185 : vector<8x32xf32> to vector<8x32xbf16>
      %c0_106 = arith.constant 0 : index
      %c0_107 = arith.constant 0 : index
      %187 = vector.load %arg22[%c0_106, %c0_107] : memref<8x32xbf16, #tpu.memory_space<vmem>>, vector<8x32xbf16>
      tpu.vector_store %arg22[%c0_106, %c0_107], %186 {strides = array<i32>} : memref<8x32xbf16, #tpu.memory_space<vmem>>, vector<8x32xbf16>,
    } else {
    }
    %c8_i32 = arith.constant 8 : i32
    %3 = arith.muli %arg1, %c8_i32 : i32
    %4 = tpu.assume_multiple %3, 8 : i32
    %c0 = arith.constant 0 : index
    %5 = arith.index_cast %4 : i32 to index
    %c0_1 = arith.constant 0 : index
    %6 = vector.load %arg2[%c0, %5, %c0_1] : memref<1x8x32xf32, #tpu.memory_space<vmem>>, vector<1x8x32xf32>
    %7 = vector.shape_cast %6 : vector<1x8x32xf32> to vector<8x32xf32>
    %8 = arith.index_cast %4 : i32 to index
    %c0_2 = arith.constant 0 : index
    %9 = vector.load %arg20[%8, %c0_2] : memref<8x32xbf16, #tpu.memory_space<vmem>>, vector<8x8xbf16>
    %c0_3 = arith.constant 0 : index
    %c0_4 = arith.constant 0 : index
    %10 = vector.load %arg21[%c0_3, %c0_4] : memref<8x32xbf16, #tpu.memory_space<vmem>>, vector<8x8xbf16>
    %c0_5 = arith.constant 0 : index
    %c0_6 = arith.constant 0 : index
    %11 = vector.load %arg22[%c0_5, %c0_6] : memref<8x32xbf16, #tpu.memory_space<vmem>>, vector<8x8xbf16>
    %cst = arith.constant dense<0.000000e+00> : vector<8x8xf32>
    %12 = tpu.matmul %9, %10, %cst {dimension_numbers = #tpu.dot_dimension_numbers<[1], [1], [0], [0], [0, 0, 1, 0], [], []>} : vector<8x8xbf16>, vector<8x8xbf16>, vector<8x8xf32> -> vector<8x8xf32>
    %cst_7 = arith.constant dense<0xFF800000> : vector<8xf32>
    %13 = vector.multi_reduction <maximumf>, %12, %cst_7 [1] : vector<8x8xf32> to vector<8xf32>
    %14 = vector.shape_cast %13 : vector<8xf32> to vector<8x1xf32>
    %15 = vector.broadcast %14 : vector<8x1xf32> to vector<8x8xf32>
    %16 = arith.subf %12, %15 : vector<8x8xf32>
    %17 = math.exp %16 : vector<8x8xf32>
    %cst_8 = arith.constant dense<0.000000e+00> : vector<8xf32>
    %18 = vector.multi_reduction <add>, %17, %cst_8 [1] : vector<8x8xf32> to vector<8xf32>
    %19 = vector.shape_cast %18 : vector<8xf32> to vector<8x1xf32>
    %20 = arith.truncf %17 : vector<8x8xf32> to vector<8x8xbf16>
    %cst_9 = arith.constant dense<0.000000e+00> : vector<8x8xf32>
    %21 = tpu.matmul %20, %11, %cst_9 {dimension_numbers = #tpu.dot_dimension_numbers<[1], [0], [0], [1], [0, 0, 1, 1], [], []>} : vector<8x8xbf16>, vector<8x8xbf16>, vector<8x8xf32> -> vector<8x8xf32>
    %22 = tpu.reciprocal %19 {approx = true} : vector<8x1xf32> -> vector<8x1xf32>
    %23 = vector.broadcast %22 : vector<8x1xf32> to vector<8x8xf32>
    %24 = arith.mulf %21, %23 : vector<8x8xf32>
    %25 = arith.truncf %24 : vector<8x8xf32> to vector<8x8xbf16>
    %c0_10 = arith.constant 0 : index
    %c0_11 = arith.constant 0 : index
    %26 = vector.load %arg23[%c0_10, %c0_11] : memref<8x32xbf16, #tpu.memory_space<vmem>>, vector<8x8xbf16>
    tpu.vector_store %arg23[%c0_10, %c0_11], %25 {strides = array<i32>} : memref<8x32xbf16, #tpu.memory_space<vmem>>, vector<8x8xbf16>,
    %27 = arith.index_cast %4 : i32 to index
    %c8 = arith.constant 8 : index
    %28 = vector.load %arg20[%27, %c8] : memref<8x32xbf16, #tpu.memory_space<vmem>>, vector<8x8xbf16>
    %c0_12 = arith.constant 0 : index
    %c8_13 = arith.constant 8 : index
    %29 = vector.load %arg21[%c0_12, %c8_13] : memref<8x32xbf16, #tpu.memory_space<vmem>>, vector<8x8xbf16>
    %c0_14 = arith.constant 0 : index
    %c8_15 = arith.constant 8 : index
    %30 = vector.load %arg22[%c0_14, %c8_15] : memref<8x32xbf16, #tpu.memory_space<vmem>>, vector<8x8xbf16>
    %cst_16 = arith.constant dense<0.000000e+00> : vector<8x8xf32>
    %31 = tpu.matmul %28, %29, %cst_16 {dimension_numbers = #tpu.dot_dimension_numbers<[1], [1], [0], [0], [0, 0, 1, 0], [], []>} : vector<8x8xbf16>, vector<8x8xbf16>, vector<8x8xf32> -> vector<8x8xf32>
    %cst_17 = arith.constant dense<0xFF800000> : vector<8xf32>
    %32 = vector.multi_reduction <maximumf>, %31, %cst_17 [1] : vector<8x8xf32> to vector<8xf32>
    %33 = vector.shape_cast %32 : vector<8xf32> to vector<8x1xf32>
    %34 = vector.broadcast %33 : vector<8x1xf32> to vector<8x8xf32>
    %35 = arith.subf %31, %34 : vector<8x8xf32>
    %36 = math.exp %35 : vector<8x8xf32>
    %cst_18 = arith.constant dense<0.000000e+00> : vector<8xf32>
    %37 = vector.multi_reduction <add>, %36, %cst_18 [1] : vector<8x8xf32> to vector<8xf32>
    %38 = vector.shape_cast %37 : vector<8xf32> to vector<8x1xf32>
    %39 = arith.truncf %36 : vector<8x8xf32> to vector<8x8xbf16>
    %cst_19 = arith.constant dense<0.000000e+00> : vector<8x8xf32>
    %40 = tpu.matmul %39, %30, %cst_19 {dimension_numbers = #tpu.dot_dimension_numbers<[1], [0], [0], [1], [0, 0, 1, 1], [], []>} : vector<8x8xbf16>, vector<8x8xbf16>, vector<8x8xf32> -> vector<8x8xf32>
    %41 = tpu.reciprocal %38 {approx = true} : vector<8x1xf32> -> vector<8x1xf32>
    %42 = vector.broadcast %41 : vector<8x1xf32> to vector<8x8xf32>
    %43 = arith.mulf %40, %42 : vector<8x8xf32>
    %44 = arith.truncf %43 : vector<8x8xf32> to vector<8x8xbf16>
    %c0_20 = arith.constant 0 : index
    %c8_21 = arith.constant 8 : index
    %45 = vector.load %arg23[%c0_20, %c8_21] : memref<8x32xbf16, #tpu.memory_space<vmem>>, vector<8x8xbf16>
    tpu.vector_store %arg23[%c0_20, %c8_21], %44 {strides = array<i32>} : memref<8x32xbf16, #tpu.memory_space<vmem>>, vector<8x8xbf16>,
    %46 = arith.index_cast %4 : i32 to index
    %c16 = arith.constant 16 : index
    %47 = vector.load %arg20[%46, %c16] : memref<8x32xbf16, #tpu.memory_space<vmem>>, vector<8x8xbf16>
    %c0_22 = arith.constant 0 : index
    %c16_23 = arith.constant 16 : index
    %48 = vector.load %arg21[%c0_22, %c16_23] : memref<8x32xbf16, #tpu.memory_space<vmem>>, vector<8x8xbf16>
    %c0_24 = arith.constant 0 : index
    %c16_25 = arith.constant 16 : index
    %49 = vector.load %arg22[%c0_24, %c16_25] : memref<8x32xbf16, #tpu.memory_space<vmem>>, vector<8x8xbf16>
    %cst_26 = arith.constant dense<0.000000e+00> : vector<8x8xf32>
    %50 = tpu.matmul %47, %48, %cst_26 {dimension_numbers = #tpu.dot_dimension_numbers<[1], [1], [0], [0], [0, 0, 1, 0], [], []>} : vector<8x8xbf16>, vector<8x8xbf16>, vector<8x8xf32> -> vector<8x8xf32>
    %cst_27 = arith.constant dense<0xFF800000> : vector<8xf32>
    %51 = vector.multi_reduction <maximumf>, %50, %cst_27 [1] : vector<8x8xf32> to vector<8xf32>
    %52 = vector.shape_cast %51 : vector<8xf32> to vector<8x1xf32>
    %53 = vector.broadcast %52 : vector<8x1xf32> to vector<8x8xf32>
    %54 = arith.subf %50, %53 : vector<8x8xf32>
    %55 = math.exp %54 : vector<8x8xf32>
    %cst_28 = arith.constant dense<0.000000e+00> : vector<8xf32>
    %56 = vector.multi_reduction <add>, %55, %cst_28 [1] : vector<8x8xf32> to vector<8xf32>
    %57 = vector.shape_cast %56 : vector<8xf32> to vector<8x1xf32>
    %58 = arith.truncf %55 : vector<8x8xf32> to vector<8x8xbf16>
    %cst_29 = arith.constant dense<0.000000e+00> : vector<8x8xf32>
    %59 = tpu.matmul %58, %49, %cst_29 {dimension_numbers = #tpu.dot_dimension_numbers<[1], [0], [0], [1], [0, 0, 1, 1], [], []>} : vector<8x8xbf16>, vector<8x8xbf16>, vector<8x8xf32> -> vector<8x8xf32>
    %60 = tpu.reciprocal %57 {approx = true} : vector<8x1xf32> -> vector<8x1xf32>
    %61 = vector.broadcast %60 : vector<8x1xf32> to vector<8x8xf32>
    %62 = arith.mulf %59, %61 : vector<8x8xf32>
    %63 = arith.truncf %62 : vector<8x8xf32> to vector<8x8xbf16>
    %c0_30 = arith.constant 0 : index
    %c16_31 = arith.constant 16 : index
    %64 = vector.load %arg23[%c0_30, %c16_31] : memref<8x32xbf16, #tpu.memory_space<vmem>>, vector<8x8xbf16>
    tpu.vector_store %arg23[%c0_30, %c16_31], %63 {strides = array<i32>} : memref<8x32xbf16, #tpu.memory_space<vmem>>, vector<8x8xbf16>,
    %65 = arith.index_cast %4 : i32 to index
    %c24 = arith.constant 24 : index
    %66 = vector.load %arg20[%65, %c24] : memref<8x32xbf16, #tpu.memory_space<vmem>>, vector<8x8xbf16>
    %c0_32 = arith.constant 0 : index
    %c24_33 = arith.constant 24 : index
    %67 = vector.load %arg21[%c0_32, %c24_33] : memref<8x32xbf16, #tpu.memory_space<vmem>>, vector<8x8xbf16>
    %c0_34 = arith.constant 0 : index
    %c24_35 = arith.constant 24 : index
    %68 = vector.load %arg22[%c0_34, %c24_35] : memref<8x32xbf16, #tpu.memory_space<vmem>>, vector<8x8xbf16>
    %cst_36 = arith.constant dense<0.000000e+00> : vector<8x8xf32>
    %69 = tpu.matmul %66, %67, %cst_36 {dimension_numbers = #tpu.dot_dimension_numbers<[1], [1], [0], [0], [0, 0, 1, 0], [], []>} : vector<8x8xbf16>, vector<8x8xbf16>, vector<8x8xf32> -> vector<8x8xf32>
    %cst_37 = arith.constant dense<0xFF800000> : vector<8xf32>
    %70 = vector.multi_reduction <maximumf>, %69, %cst_37 [1] : vector<8x8xf32> to vector<8xf32>
    %71 = vector.shape_cast %70 : vector<8xf32> to vector<8x1xf32>
    %72 = vector.broadcast %71 : vector<8x1xf32> to vector<8x8xf32>
    %73 = arith.subf %69, %72 : vector<8x8xf32>
    %74 = math.exp %73 : vector<8x8xf32>
    %cst_38 = arith.constant dense<0.000000e+00> : vector<8xf32>
    %75 = vector.multi_reduction <add>, %74, %cst_38 [1] : vector<8x8xf32> to vector<8xf32>
    %76 = vector.shape_cast %75 : vector<8xf32> to vector<8x1xf32>
    %77 = arith.truncf %74 : vector<8x8xf32> to vector<8x8xbf16>
    %cst_39 = arith.constant dense<0.000000e+00> : vector<8x8xf32>
    %78 = tpu.matmul %77, %68, %cst_39 {dimension_numbers = #tpu.dot_dimension_numbers<[1], [0], [0], [1], [0, 0, 1, 1], [], []>} : vector<8x8xbf16>, vector<8x8xbf16>, vector<8x8xf32> -> vector<8x8xf32>
    %79 = tpu.reciprocal %76 {approx = true} : vector<8x1xf32> -> vector<8x1xf32>
    %80 = vector.broadcast %79 : vector<8x1xf32> to vector<8x8xf32>
    %81 = arith.mulf %78, %80 : vector<8x8xf32>
    %82 = arith.truncf %81 : vector<8x8xf32> to vector<8x8xbf16>
    %c0_40 = arith.constant 0 : index
    %c24_41 = arith.constant 24 : index
    %83 = vector.load %arg23[%c0_40, %c24_41] : memref<8x32xbf16, #tpu.memory_space<vmem>>, vector<8x8xbf16>
    tpu.vector_store %arg23[%c0_40, %c24_41], %82 {strides = array<i32>} : memref<8x32xbf16, #tpu.memory_space<vmem>>, vector<8x8xbf16>,
    %c0_42 = arith.constant 0 : index
    %c0_43 = arith.constant 0 : index
    %84 = vector.load %arg23[%c0_42, %c0_43] : memref<8x32xbf16, #tpu.memory_space<vmem>>, vector<8x32xbf16>
    %c0_44 = arith.constant 0 : index
    %c0_45 = arith.constant 0 : index
    %85 = vector.load %arg11[%c0_44, %c0_45] : memref<32x32xbf16, #tpu.memory_space<vmem>>, vector<32x32xbf16>
    %cst_46 = arith.constant dense<0.000000e+00> : vector<8x32xf32>
    %86 = tpu.matmul %84, %85, %cst_46 {dimension_numbers = #tpu.dot_dimension_numbers<[1], [0], [0], [1], [0, 0, 1, 1], [], []>} : vector<8x32xbf16>, vector<32x32xbf16>, vector<8x32xf32> -> vector<8x32xf32>
    %c0_47 = arith.constant 0 : index
    %c0_48 = arith.constant 0 : index
    %87 = vector.load %arg12[%c0_47, %c0_48] : memref<1x32xf32, #tpu.memory_space<vmem>>, vector<1x32xf32>
    %88 = vector.broadcast %87 : vector<1x32xf32> to vector<8x32xf32>
    %89 = arith.addf %86, %88 : vector<8x32xf32>
    %90 = arith.addf %7, %89 : vector<8x32xf32>
    %c0_49 = arith.constant 0 : index
    %c0_50 = arith.constant 0 : index
    %91 = vector.load %arg13[%c0_49, %c0_50] : memref<1x32xf32, #tpu.memory_space<vmem>>, vector<1x32xf32>
    %c0_51 = arith.constant 0 : index
    %c0_52 = arith.constant 0 : index
    %92 = vector.load %arg14[%c0_51, %c0_52] : memref<1x32xf32, #tpu.memory_space<vmem>>, vector<1x32xf32>
    %cst_53 = arith.constant dense<0.000000e+00> : vector<8xf32>
    %93 = vector.multi_reduction <add>, %90, %cst_53 [1] : vector<8x32xf32> to vector<8xf32>
    %94 = vector.shape_cast %93 : vector<8xf32> to vector<8x1xf32>
    %cst_54 = arith.constant 3.200000e+01 : f32
    %95 = vector.broadcast %cst_54 : f32 to vector<8x1xf32>
    %96 = arith.divf %94, %95 : vector<8x1xf32>
    %97 = vector.broadcast %96 : vector<8x1xf32> to vector<8x32xf32>
    %98 = arith.subf %90, %97 : vector<8x32xf32>
    %99 = arith.mulf %98, %98 : vector<8x32xf32>
    %cst_55 = arith.constant dense<0.000000e+00> : vector<8xf32>
    %100 = vector.multi_reduction <add>, %99, %cst_55 [1] : vector<8x32xf32> to vector<8xf32>
    %101 = vector.shape_cast %100 : vector<8xf32> to vector<8x1xf32>
    %cst_56 = arith.constant 3.200000e+01 : f32
    %102 = vector.broadcast %cst_56 : f32 to vector<8x1xf32>
    %103 = arith.divf %101, %102 : vector<8x1xf32>
    %cst_57 = arith.constant 9.99999974E-6 : f32
    %104 = vector.broadcast %cst_57 : f32 to vector<8x1xf32>
    %105 = arith.addf %103, %104 : vector<8x1xf32>
    %106 = math.rsqrt %105 : vector<8x1xf32>
    %107 = vector.broadcast %106 : vector<8x1xf32> to vector<8x32xf32>
    %108 = arith.mulf %98, %107 : vector<8x32xf32>
    %109 = vector.broadcast %91 : vector<1x32xf32> to vector<8x32xf32>
    %110 = arith.mulf %108, %109 : vector<8x32xf32>
    %111 = vector.broadcast %92 : vector<1x32xf32> to vector<8x32xf32>
    %112 = arith.addf %110, %111 : vector<8x32xf32>
    %113 = arith.truncf %112 : vector<8x32xf32> to vector<8x32xbf16>
    %c0_58 = arith.constant 0 : index
    %c0_59 = arith.constant 0 : index
    %114 = vector.load %arg15[%c0_58, %c0_59] : memref<32x128xbf16, #tpu.memory_space<vmem>>, vector<32x128xbf16>
    %cst_60 = arith.constant dense<0.000000e+00> : vector<8x128xf32>
    %115 = tpu.matmul %113, %114, %cst_60 {dimension_numbers = #tpu.dot_dimension_numbers<[1], [0], [0], [1], [0, 0, 1, 1], [], []>} : vector<8x32xbf16>, vector<32x128xbf16>, vector<8x128xf32> -> vector<8x128xf32>
    %c0_61 = arith.constant 0 : index
    %c0_62 = arith.constant 0 : index
    %116 = vector.load %arg16[%c0_61, %c0_62] : memref<1x128xf32, #tpu.memory_space<vmem>>, vector<1x128xf32>
    %117 = vector.broadcast %116 : vector<1x128xf32> to vector<8x128xf32>
    %118 = arith.addf %115, %117 : vector<8x128xf32>
    %cst_63 = arith.constant 5.000000e-01 : f32
    %119 = vector.broadcast %cst_63 : f32 to vector<8x128xf32>
    %120 = arith.mulf %119, %118 : vector<8x128xf32>
    %cst_64 = arith.constant 4.471500e-02 : f32
    %121 = vector.broadcast %cst_64 : f32 to vector<8x128xf32>
    %122 = arith.mulf %121, %118 : vector<8x128xf32>
    %123 = arith.mulf %122, %118 : vector<8x128xf32>
    %124 = arith.mulf %123, %118 : vector<8x128xf32>
    %125 = arith.addf %118, %124 : vector<8x128xf32>
    %cst_65 = arith.constant 0.797884583 : f32
    %126 = vector.broadcast %cst_65 : f32 to vector<8x128xf32>
    %127 = arith.mulf %126, %125 : vector<8x128xf32>
    %128 = math.tanh %127 : vector<8x128xf32>
    %cst_66 = arith.constant 1.000000e+00 : f32
    %129 = vector.broadcast %cst_66 : f32 to vector<8x128xf32>
    %130 = arith.addf %129, %128 : vector<8x128xf32>
    %131 = arith.mulf %120, %130 : vector<8x128xf32>
    %132 = arith.truncf %131 : vector<8x128xf32> to vector<8x128xbf16>
    %c0_67 = arith.constant 0 : index
    %c0_68 = arith.constant 0 : index
    %133 = vector.load %arg17[%c0_67, %c0_68] : memref<128x32xbf16, #tpu.memory_space<vmem>>, vector<128x32xbf16>
    %cst_69 = arith.constant dense<0.000000e+00> : vector<8x32xf32>
    %134 = tpu.matmul %132, %133, %cst_69 {dimension_numbers = #tpu.dot_dimension_numbers<[1], [0], [0], [1], [0, 0, 1, 1], [], []>} : vector<8x128xbf16>, vector<128x32xbf16>, vector<8x32xf32> -> vector<8x32xf32>
    %c0_70 = arith.constant 0 : index
    %c0_71 = arith.constant 0 : index
    %135 = vector.load %arg18[%c0_70, %c0_71] : memref<1x32xf32, #tpu.memory_space<vmem>>, vector<1x32xf32>
    %136 = vector.broadcast %135 : vector<1x32xf32> to vector<8x32xf32>
    %137 = arith.addf %134, %136 : vector<8x32xf32>
    %138 = arith.addf %90, %137 : vector<8x32xf32>
    %c0_72 = arith.constant 0 : index
    %c0_73 = arith.constant 0 : index
    %c0_74 = arith.constant 0 : index
    %139 = vector.load %arg19[%c0_72, %c0_73, %c0_74] : memref<1x8x32xf32, #tpu.memory_space<vmem>>, vector<1x8x32xf32>
    %140 = vector.shape_cast %139 : vector<1x8x32xf32> to vector<8x32xf32>
    %141 = vector.shape_cast %138 : vector<8x32xf32> to vector<1x8x32xf32>
    tpu.vector_store %arg19[%c0_72, %c0_73, %c0_74], %141 {strides = array<i32>} : memref<1x8x32xf32, #tpu.memory_space<vmem>>, vector<1x8x32xf32>,
    return
  }
  func.func @transform_0(%arg0: i32, %arg1: i32) -> (i32, i32, i32) {
    %c0_i32 = arith.constant 0 : i32
    %c0_i32_0 = arith.constant 0 : i32
    %c0_i32_1 = arith.constant 0 : i32
    return %arg0, %c0_i32, %c0_i32_0 : i32, i32, i32
  }
  func.func @transform_1(%arg0: i32, %arg1: i32) -> (i32, i32) {
    %c0_i32 = arith.constant 0 : i32
    %c0_i32_0 = arith.constant 0 : i32
    %c0_i32_1 = arith.constant 0 : i32
    return %c0_i32, %c0_i32_0 : i32, i32
  }
  func.func @transform_2(%arg0: i32, %arg1: i32) -> (i32, i32) {
    %c0_i32 = arith.constant 0 : i32
    %c0_i32_0 = arith.constant 0 : i32
    %c0_i32_1 = arith.constant 0 : i32
    return %c0_i32, %c0_i32_0 : i32, i32
  }
  func.func @transform_3(%arg0: i32, %arg1: i32) -> (i32, i32) {
    %c0_i32 = arith.constant 0 : i32
    %c0_i32_0 = arith.constant 0 : i32
    %c0_i32_1 = arith.constant 0 : i32
    return %c0_i32, %c0_i32_0 : i32, i32
  }
  func.func @transform_4(%arg0: i32, %arg1: i32) -> (i32, i32) {
    %c0_i32 = arith.constant 0 : i32
    %c0_i32_0 = arith.constant 0 : i32
    %c0_i32_1 = arith.constant 0 : i32
    return %c0_i32, %c0_i32_0 : i32, i32
  }
  func.func @transform_5(%arg0: i32, %arg1: i32) -> (i32, i32) {
    %c0_i32 = arith.constant 0 : i32
    %c0_i32_0 = arith.constant 0 : i32
    %c0_i32_1 = arith.constant 0 : i32
    return %c0_i32, %c0_i32_0 : i32, i32
  }
  func.func @transform_6(%arg0: i32, %arg1: i32) -> (i32, i32) {
    %c0_i32 = arith.constant 0 : i32
    %c0_i32_0 = arith.constant 0 : i32
    %c0_i32_1 = arith.constant 0 : i32
    return %c0_i32, %c0_i32_0 : i32, i32
  }
  func.func @transform_7(%arg0: i32, %arg1: i32) -> (i32, i32) {
    %c0_i32 = arith.constant 0 : i32
    %c0_i32_0 = arith.constant 0 : i32
    %c0_i32_1 = arith.constant 0 : i32
    return %c0_i32, %c0_i32_0 : i32, i32
  }
  func.func @transform_8(%arg0: i32, %arg1: i32) -> (i32, i32) {
    %c0_i32 = arith.constant 0 : i32
    %c0_i32_0 = arith.constant 0 : i32
    %c0_i32_1 = arith.constant 0 : i32
    return %c0_i32, %c0_i32_0 : i32, i32
  }
  func.func @transform_9(%arg0: i32, %arg1: i32) -> (i32, i32) {
    %c0_i32 = arith.constant 0 : i32
    %c0_i32_0 = arith.constant 0 : i32
    %c0_i32_1 = arith.constant 0 : i32
    return %c0_i32, %c0_i32_0 : i32, i32
  }
  func.func @transform_10(%arg0: i32, %arg1: i32) -> (i32, i32) {
    %c0_i32 = arith.constant 0 : i32
    %c0_i32_0 = arith.constant 0 : i32
    %c0_i32_1 = arith.constant 0 : i32
    return %c0_i32, %c0_i32_0 : i32, i32
  }
  func.func @transform_11(%arg0: i32, %arg1: i32) -> (i32, i32) {
    %c0_i32 = arith.constant 0 : i32
    %c0_i32_0 = arith.constant 0 : i32
    %c0_i32_1 = arith.constant 0 : i32
    return %c0_i32, %c0_i32_0 : i32, i32
  }
  func.func @transform_12(%arg0: i32, %arg1: i32) -> (i32, i32) {
    %c0_i32 = arith.constant 0 : i32
    %c0_i32_0 = arith.constant 0 : i32
    %c0_i32_1 = arith.constant 0 : i32
    return %c0_i32, %c0_i32_0 : i32, i32
  }
  func.func @transform_13(%arg0: i32, %arg1: i32) -> (i32, i32) {
    %c0_i32 = arith.constant 0 : i32
    %c0_i32_0 = arith.constant 0 : i32
    %c0_i32_1 = arith.constant 0 : i32
    return %c0_i32, %c0_i32_0 : i32, i32
  }
  func.func @transform_14(%arg0: i32, %arg1: i32) -> (i32, i32) {
    %c0_i32 = arith.constant 0 : i32
    %c0_i32_0 = arith.constant 0 : i32
    %c0_i32_1 = arith.constant 0 : i32
    return %c0_i32, %c0_i32_0 : i32, i32
  }
  func.func @transform_15(%arg0: i32, %arg1: i32) -> (i32, i32) {
    %c0_i32 = arith.constant 0 : i32
    %c0_i32_0 = arith.constant 0 : i32
    %c0_i32_1 = arith.constant 0 : i32
    return %c0_i32, %c0_i32_0 : i32, i32
  }
  func.func @transform_16(%arg0: i32, %arg1: i32) -> (i32, i32) {
    %c0_i32 = arith.constant 0 : i32
    %c0_i32_0 = arith.constant 0 : i32
    %c0_i32_1 = arith.constant 0 : i32
    return %c0_i32, %c0_i32_0 : i32, i32
  }
  func.func @transform_17(%arg0: i32, %arg1: i32) -> (i32, i32, i32) {
    %c0_i32 = arith.constant 0 : i32
    %c0_i32_0 = arith.constant 0 : i32
    return %arg0, %arg1, %c0_i32 : i32, i32, i32
  }
}

module attributes {stable_mosaic.version = 11 : i64} {
  func.func @_clip_layer_kernel(%arg0: i32, %arg1: i32, %arg2: memref<1x8x32xf32, #tpu.memory_space<vmem>>, %arg3: memref<1x32xf32, #tpu.memory_space<vmem>>, %arg4: memref<1x32xf32, #tpu.memory_space<vmem>>, %arg5: memref<32x32xbf16, #tpu.memory_space<vmem>>, %arg6: memref<1x32xf32, #tpu.memory_space<vmem>>, %arg7: memref<32x32xbf16, #tpu.memory_space<vmem>>, %arg8: memref<1x32xf32, #tpu.memory_space<vmem>>, %arg9: memref<32x32xbf16, #tpu.memory_space<vmem>>, %arg10: memref<1x32xf32, #tpu.memory_space<vmem>>, %arg11: memref<32x32xbf16, #tpu.memory_space<vmem>>, %arg12: memref<1x32xf32, #tpu.memory_space<vmem>>, %arg13: memref<1x32xf32, #tpu.memory_space<vmem>>, %arg14: memref<1x32xf32, #tpu.memory_space<vmem>>, %arg15: memref<32x128xbf16, #tpu.memory_space<vmem>>, %arg16: memref<1x128xf32, #tpu.memory_space<vmem>>, %arg17: memref<128x32xbf16, #tpu.memory_space<vmem>>, %arg18: memref<1x32xf32, #tpu.memory_space<vmem>>, %arg19: memref<1x8x32xf32, #tpu.memory_space<vmem>>, %arg20: memref<8x32xbf16, #tpu.memory_space<vmem>>, %arg21: memref<8x32xbf16, #tpu.memory_space<vmem>>, %arg22: memref<8x32xbf16, #tpu.memory_space<vmem>>, %arg23: memref<8x32xbf16, #tpu.memory_space<vmem>>) attributes {dimension_semantics = [#tpu.dimension_semantics<parallel>, #tpu.dimension_semantics<arbitrary>], iteration_bounds = array<i64: 2, 1>, scalar_prefetch = 0 : i64, scratch_operands = 4 : i64, tpu.core_type = #tpu.core_type<tc>, window_params = [{transform_indices = @transform_0, window_bounds = array<i64: 1, 8, 32>}, {pipeline_mode = #tpu.pipeline_mode<synchronous>, transform_indices = @transform_1, window_bounds = array<i64: 1, 32>}, {pipeline_mode = #tpu.pipeline_mode<synchronous>, transform_indices = @transform_2, window_bounds = array<i64: 1, 32>}, {pipeline_mode = #tpu.pipeline_mode<synchronous>, transform_indices = @transform_3, window_bounds = array<i64: 32, 32>}, {pipeline_mode = #tpu.pipeline_mode<synchronous>, transform_indices = @transform_4, window_bounds = array<i64: 1, 32>}, {pipeline_mode = #tpu.pipeline_mode<synchronous>, transform_indices = @transform_5, window_bounds = array<i64: 32, 32>}, {pipeline_mode = #tpu.pipeline_mode<synchronous>, transform_indices = @transform_6, window_bounds = array<i64: 1, 32>}, {pipeline_mode = #tpu.pipeline_mode<synchronous>, transform_indices = @transform_7, window_bounds = array<i64: 32, 32>}, {pipeline_mode = #tpu.pipeline_mode<synchronous>, transform_indices = @transform_8, window_bounds = array<i64: 1, 32>}, {pipeline_mode = #tpu.pipeline_mode<synchronous>, transform_indices = @transform_9, window_bounds = array<i64: 32, 32>}, {pipeline_mode = #tpu.pipeline_mode<synchronous>, transform_indices = @transform_10, window_bounds = array<i64: 1, 32>}, {pipeline_mode = #tpu.pipeline_mode<synchronous>, transform_indices = @transform_11, window_bounds = array<i64: 1, 32>}, {pipeline_mode = #tpu.pipeline_mode<synchronous>, transform_indices = @transform_12, window_bounds = array<i64: 1, 32>}, {pipeline_mode = #tpu.pipeline_mode<synchronous>, transform_indices = @transform_13, window_bounds = array<i64: 32, 128>}, {pipeline_mode = #tpu.pipeline_mode<synchronous>, transform_indices = @transform_14, window_bounds = array<i64: 1, 128>}, {pipeline_mode = #tpu.pipeline_mode<synchronous>, transform_indices = @transform_15, window_bounds = array<i64: 128, 32>}, {pipeline_mode = #tpu.pipeline_mode<synchronous>, transform_indices = @transform_16, window_bounds = array<i64: 1, 32>}, {transform_indices = @transform_17, window_bounds = array<i64: 1, 8, 32>}]} {
    %c0_i32 = arith.constant 0 : i32
    %0 = arith.cmpi eq, %arg1, %c0_i32 : i32
    %1 = arith.extui %0 : i1 to i32
    %c0_i32_0 = arith.constant 0 : i32
    %2 = arith.cmpi ne, %1, %c0_i32_0 : i32
    scf.if %2 {
      %c0_75 = arith.constant 0 : index
      %c0_76 = arith.constant 0 : index
      %c0_77 = arith.constant 0 : index
      %142 = vector.load %arg2[%c0_75, %c0_76, %c0_77] : memref<1x8x32xf32, #tpu.memory_space<vmem>>, vector<1x8x32xf32>
      %143 = vector.shape_cast %142 : vector<1x8x32xf32> to vector<8x32xf32>
      %c0_78 = arith.constant 0 : index
      %c0_79 = arith.constant 0 : index
      %144 = vector.load %arg3[%c0_78, %c0_79] : memref<1x32xf32, #tpu.memory_space<vmem>>, vector<1x32xf32>
      %c0_80 = arith.constant 0 : index
      %c0_81 = arith.constant 0 : index
      %145 = vector.load %arg4[%c0_80, %c0_81] : memref<1x32xf32, #tpu.memory_space<vmem>>, vector<1x32xf32>
      %cst_82 = arith.constant dense<0.000000e+00> : vector<8xf32>
      %146 = vector.multi_reduction <add>, %143, %cst_82 [1] : vector<8x32xf32> to vector<8xf32>
      %147 = vector.shape_cast %146 : vector<8xf32> to vector<8x1xf32>
      %cst_83 = arith.constant 3.200000e+01 : f32
      %148 = vector.broadcast %cst_83 : f32 to vector<8x1xf32>
      %149 = arith.divf %147, %148 : vector<8x1xf32>
      %150 = vector.broadcast %149 : vector<8x1xf32> to vector<8x32xf32>
      %151 = arith.subf %143, %150 : vector<8x32xf32>
      %152 = arith.mulf %151, %151 : vector<8x32xf32>
      %cst_84 = arith.constant dense<0.000000e+00> : vector<8xf32>
      %153 = vector.multi_reduction <add>, %152, %cst_84 [1] : vector<8x32xf32> to vector<8xf32>
      %154 = vector.shape_cast %153 : vector<8xf32> to vector<8x1xf32>
      %cst_85 = arith.constant 3.200000e+01 : f32
      %155 = vector.broadcast %cst_85 : f32 to vector<8x1xf32>
      %156 = arith.divf %154, %155 : vector<8x1xf32>
      %cst_86 = arith.constant 9.99999974E-6 : f32
      %157 = vector.broadcast %cst_86 : f32 to vector<8x1xf32>
      %158 = arith.addf %156, %157 : vector<8x1xf32>
      %159 = math.rsqrt %158 : vector<8x1xf32>
      %160 = vector.broadcast %159 : vector<8x1xf32> to vector<8x32xf32>
      %161 = arith.mulf %151, %160 : vector<8x32xf32>
      %162 = vector.broadcast %144 : vector<1x32xf32> to vector<8x32xf32>
      %163 = arith.mulf %161, %162 : vector<8x32xf32>
      %164 = vector.broadcast %145 : vector<1x32xf32> to vector<8x32xf32>
      %165 = arith.addf %163, %164 : vector<8x32xf32>
      %166 = arith.truncf %165 : vector<8x32xf32> to vector<8x32xbf16>
      %c0_87 = arith.constant 0 : index
      %c0_88 = arith.constant 0 : index
      %167 = vector.load %arg5[%c0_87, %c0_88] : memref<32x32xbf16, #tpu.memory_space<vmem>>, vector<32x32xbf16>
      %cst_89 = arith.constant dense<0.000000e+00> : vector<8x32xf32>
      %168 = tpu.matmul %166, %167, %cst_89 {dimension_numbers = #tpu.dot_dimension_numbers<[1], [0], [0], [1], [0, 0, 1, 1], [], []>} : vector<8x32xbf16>, vector<32x32xbf16>, vector<8x32xf32> -> vector<8x32xf32>
      %c0_90 = arith.constant 0 : index
      %c0_91 = arith.constant 0 : index
      %169 = vector.load %arg6[%c0_90, %c0_91] : memref<1x32xf32, #tpu.memory_space<vmem>>, vector<1x32xf32>
      %170 = vector.broadcast %169 : vector<1x32xf32> to vector<8x32xf32>
      %171 = arith.addf %168, %170 : vector<8x32xf32>
      %172 = arith.truncf %171 : vector<8x32xf32> to vector<8x32xbf16>
      %c0_92 = arith.constant 0 : index
      %c0_93 = arith.constant 0 : index
      %173 = vector.load %arg20[%c0_92, %c0_93] : memref<8x32xbf16, #tpu.memory_space<vmem>>, vector<8x32xbf16>
      tpu.vector_store %arg20[%c0_92, %c0_93], %172 {strides = array<i32>} : memref<8x32xbf16, #tpu.memory_space<vmem>>, vector<8x32xbf16>,
      %c0_94 = arith.constant 0 : index
      %c0_95 = arith.constant 0 : index
      %174 = vector.load %arg7[%c0_94, %c0_95] : memref<32x32xbf16, #tpu.memory_space<vmem>>, vector<32x32xbf16>
      %cst_96 = arith.constant dense<0.000000e+00> : vector<8x32xf32>
      %175 = tpu.matmul %166, %174, %cst_96 {dimension_numbers = #tpu.dot_dimension_numbers<[1], [0], [0], [1], [0, 0, 1, 1], [], []>} : vector<8x32xbf16>, vector<32x32xbf16>, vector<8x32xf32> -> vector<8x32xf32>
      %c0_97 = arith.constant 0 : index
      %c0_98 = arith.constant 0 : index
      %176 = vector.load %arg8[%c0_97, %c0_98] : memref<1x32xf32, #tpu.memory_space<vmem>>, vector<1x32xf32>
      %177 = vector.broadcast %176 : vector<1x32xf32> to vector<8x32xf32>
      %178 = arith.addf %175, %177 : vector<8x32xf32>
      %179 = arith.truncf %178 : vector<8x32xf32> to vector<8x32xbf16>
      %c0_99 = arith.constant 0 : index
      %c0_100 = arith.constant 0 : index
      %180 = vector.load %arg21[%c0_99, %c0_100] : memref<8x32xbf16, #tpu.memory_space<vmem>>, vector<8x32xbf16>
      tpu.vector_store %arg21[%c0_99, %c0_100], %179 {strides = array<i32>} : memref<8x32xbf16, #tpu.memory_space<vmem>>, vector<8x32xbf16>,
      %c0_101 = arith.constant 0 : index
      %c0_102 = arith.constant 0 : index
      %181 = vector.load %arg9[%c0_101, %c0_102] : memref<32x32xbf16, #tpu.memory_space<vmem>>, vector<32x32xbf16>
      %cst_103 = arith.constant dense<0.000000e+00> : vector<8x32xf32>
      %182 = tpu.matmul %166, %181, %cst_103 {dimension_numbers = #tpu.dot_dimension_numbers<[1], [0], [0], [1], [0, 0, 1, 1], [], []>} : vector<8x32xbf16>, vector<32x32xbf16>, vector<8x32xf32> -> vector<8x32xf32>
      %c0_104 = arith.constant 0 : index
      %c0_105 = arith.constant 0 : index
      %183 = vector.load %arg10[%c0_104, %c0_105] : memref<1x32xf32, #tpu.memory_space<vmem>>, vector<1x32xf32>
      %184 = vector.broadcast %183 : vector<1x32xf32> to vector<8x32xf32>
      %185 = arith.addf %182, %184 : vector<8x32xf32>
      %186 = arith.truncf %185 : vector<8x32xf32> to vector<8x32xbf16>
      %c0_106 = arith.constant 0 : index
      %c0_107 = arith.constant 0 : index
      %187 = vector.load %arg22[%c0_106, %c0_107] : memref<8x32xbf16, #tpu.memory_space<vmem>>, vector<8x32xbf16>
      tpu.vector_store %arg22[%c0_106, %c0_107], %186 {strides = array<i32>} : memref<8x32xbf16, #tpu.memory_space<vmem>>, vector<8x32xbf16>,
    } else {
    }
    %c8_i32 = arith.constant 8 : i32
    %3 = arith.muli %arg1, %c8_i32 : i32
    %4 = tpu.assume_multiple %3, 8 : i32
    %c0 = arith.constant 0 : index
    %5 = arith.index_cast %4 : i32 to index
    %c0_1 = arith.constant 0 : index
    %6 = vector.load %arg2[%c0, %5, %c0_1] : memref<1x8x32xf32, #tpu.memory_space<vmem>>, vector<1x8x32xf32>
    %7 = vector.shape_cast %6 : vector<1x8x32xf32> to vector<8x32xf32>
    %8 = arith.index_cast %4 : i32 to index
    %c0_2 = arith.constant 0 : index
    %9 = vector.load %arg20[%8, %c0_2] : memref<8x32xbf16, #tpu.memory_space<vmem>>, vector<8x8xbf16>
    %c0_3 = arith.constant 0 : index
    %c0_4 = arith.constant 0 : index
    %10 = vector.load %arg21[%c0_3, %c0_4] : memref<8x32xbf16, #tpu.memory_space<vmem>>, vector<8x8xbf16>
    %c0_5 = arith.constant 0 : index
    %c0_6 = arith.constant 0 : index
    %11 = vector.load %arg22[%c0_5, %c0_6] : memref<8x32xbf16, #tpu.memory_space<vmem>>, vector<8x8xbf16>
    %cst = arith.constant dense<0.000000e+00> : vector<8x8xf32>
    %12 = tpu.matmul %9, %10, %cst {dimension_numbers = #tpu.dot_dimension_numbers<[1], [1], [0], [0], [0, 0, 1, 0], [], []>} : vector<8x8xbf16>, vector<8x8xbf16>, vector<8x8xf32> -> vector<8x8xf32>
    %cst_7 = arith.constant dense<0xFF800000> : vector<8xf32>
    %13 = vector.multi_reduction <maximumf>, %12, %cst_7 [1] : vector<8x8xf32> to vector<8xf32>
    %14 = vector.shape_cast %13 : vector<8xf32> to vector<8x1xf32>
    %15 = vector.broadcast %14 : vector<8x1xf32> to vector<8x8xf32>
    %16 = arith.subf %12, %15 : vector<8x8xf32>
    %17 = math.exp %16 : vector<8x8xf32>
    %cst_8 = arith.constant dense<0.000000e+00> : vector<8xf32>
    %18 = vector.multi_reduction <add>, %17, %cst_8 [1] : vector<8x8xf32> to vector<8xf32>
    %19 = vector.shape_cast %18 : vector<8xf32> to vector<8x1xf32>
    %20 = arith.truncf %17 : vector<8x8xf32> to vector<8x8xbf16>
    %cst_9 = arith.constant dense<0.000000e+00> : vector<8x8xf32>
    %21 = tpu.matmul %20, %11, %cst_9 {dimension_numbers = #tpu.dot_dimension_numbers<[1], [0], [0], [1], [0, 0, 1, 1], [], []>} : vector<8x8xbf16>, vector<8x8xbf16>, vector<8x8xf32> -> vector<8x8xf32>
    %22 = tpu.reciprocal %19 {approx = true} : vector<8x1xf32> -> vector<8x1xf32>
    %23 = vector.broadcast %22 : vector<8x1xf32> to vector<8x8xf32>
    %24 = arith.mulf %21, %23 : vector<8x8xf32>
    %25 = arith.truncf %24 : vector<8x8xf32> to vector<8x8xbf16>
    %c0_10 = arith.constant 0 : index
    %c0_11 = arith.constant 0 : index
    %26 = vector.load %arg23[%c0_10, %c0_11] : memref<8x32xbf16, #tpu.memory_space<vmem>>, vector<8x8xbf16>
    tpu.vector_store %arg23[%c0_10, %c0_11], %25 {strides = array<i32>} : memref<8x32xbf16, #tpu.memory_space<vmem>>, vector<8x8xbf16>,
    %27 = arith.index_cast %4 : i32 to index
    %c8 = arith.constant 8 : index
    %28 = vector.load %arg20[%27, %c8] : memref<8x32xbf16, #tpu.memory_space<vmem>>, vector<8x8xbf16>
    %c0_12 = arith.constant 0 : index
    %c8_13 = arith.constant 8 : index
    %29 = vector.load %arg21[%c0_12, %c8_13] : memref<8x32xbf16, #tpu.memory_space<vmem>>, vector<8x8xbf16>
    %c0_14 = arith.constant 0 : index
    %c8_15 = arith.constant 8 : index
    %30 = vector.load %arg22[%c0_14, %c8_15] : memref<8x32xbf16, #tpu.memory_space<vmem>>, vector<8x8xbf16>
    %cst_16 = arith.constant dense<0.000000e+00> : vector<8x8xf32>
    %31 = tpu.matmul %28, %29, %cst_16 {dimension_numbers = #tpu.dot_dimension_numbers<[1], [1], [0], [0], [0, 0, 1, 0], [], []>} : vector<8x8xbf16>, vector<8x8xbf16>, vector<8x8xf32> -> vector<8x8xf32>
    %cst_17 = arith.constant dense<0xFF800000> : vector<8xf32>
    %32 = vector.multi_reduction <maximumf>, %31, %cst_17 [1] : vector<8x8xf32> to vector<8xf32>
    %33 = vector.shape_cast %32 : vector<8xf32> to vector<8x1xf32>
    %34 = vector.broadcast %33 : vector<8x1xf32> to vector<8x8xf32>
    %35 = arith.subf %31, %34 : vector<8x8xf32>
    %36 = math.exp %35 : vector<8x8xf32>
    %cst_18 = arith.constant dense<0.000000e+00> : vector<8xf32>
    %37 = vector.multi_reduction <add>, %36, %cst_18 [1] : vector<8x8xf32> to vector<8xf32>
    %38 = vector.shape_cast %37 : vector<8xf32> to vector<8x1xf32>
    %39 = arith.truncf %36 : vector<8x8xf32> to vector<8x8xbf16>
    %cst_19 = arith.constant dense<0.000000e+00> : vector<8x8xf32>
    %40 = tpu.matmul %39, %30, %cst_19 {dimension_numbers = #tpu.dot_dimension_numbers<[1], [0], [0], [1], [0, 0, 1, 1], [], []>} : vector<8x8xbf16>, vector<8x8xbf16>, vector<8x8xf32> -> vector<8x8xf32>
    %41 = tpu.reciprocal %38 {approx = true} : vector<8x1xf32> -> vector<8x1xf32>
    %42 = vector.broadcast %41 : vector<8x1xf32> to vector<8x8xf32>
    %43 = arith.mulf %40, %42 : vector<8x8xf32>
    %44 = arith.truncf %43 : vector<8x8xf32> to vector<8x8xbf16>
    %c0_20 = arith.constant 0 : index
    %c8_21 = arith.constant 8 : index
    %45 = vector.load %arg23[%c0_20, %c8_21] : memref<8x32xbf16, #tpu.memory_space<vmem>>, vector<8x8xbf16>
    tpu.vector_store %arg23[%c0_20, %c8_21], %44 {strides = array<i32>} : memref<8x32xbf16, #tpu.memory_space<vmem>>, vector<8x8xbf16>,
    %46 = arith.index_cast %4 : i32 to index
    %c16 = arith.constant 16 : index
    %47 = vector.load %arg20[%46, %c16] : memref<8x32xbf16, #tpu.memory_space<vmem>>, vector<8x8xbf16>
    %c0_22 = arith.constant 0 : index
    %c16_23 = arith.constant 16 : index
    %48 = vector.load %arg21[%c0_22, %c16_23] : memref<8x32xbf16, #tpu.memory_space<vmem>>, vector<8x8xbf16>
    %c0_24 = arith.constant 0 : index
    %c16_25 = arith.constant 16 : index
    %49 = vector.load %arg22[%c0_24, %c16_25] : memref<8x32xbf16, #tpu.memory_space<vmem>>, vector<8x8xbf16>
    %cst_26 = arith.constant dense<0.000000e+00> : vector<8x8xf32>
    %50 = tpu.matmul %47, %48, %cst_26 {dimension_numbers = #tpu.dot_dimension_numbers<[1], [1], [0], [0], [0, 0, 1, 0], [], []>} : vector<8x8xbf16>, vector<8x8xbf16>, vector<8x8xf32> -> vector<8x8xf32>
    %cst_27 = arith.constant dense<0xFF800000> : vector<8xf32>
    %51 = vector.multi_reduction <maximumf>, %50, %cst_27 [1] : vector<8x8xf32> to vector<8xf32>
    %52 = vector.shape_cast %51 : vector<8xf32> to vector<8x1xf32>
    %53 = vector.broadcast %52 : vector<8x1xf32> to vector<8x8xf32>
    %54 = arith.subf %50, %53 : vector<8x8xf32>
    %55 = math.exp %54 : vector<8x8xf32>
    %cst_28 = arith.constant dense<0.000000e+00> : vector<8xf32>
    %56 = vector.multi_reduction <add>, %55, %cst_28 [1] : vector<8x8xf32> to vector<8xf32>
    %57 = vector.shape_cast %56 : vector<8xf32> to vector<8x1xf32>
    %58 = arith.truncf %55 : vector<8x8xf32> to vector<8x8xbf16>
    %cst_29 = arith.constant dense<0.000000e+00> : vector<8x8xf32>
    %59 = tpu.matmul %58, %49, %cst_29 {dimension_numbers = #tpu.dot_dimension_numbers<[1], [0], [0], [1], [0, 0, 1, 1], [], []>} : vector<8x8xbf16>, vector<8x8xbf16>, vector<8x8xf32> -> vector<8x8xf32>
    %60 = tpu.reciprocal %57 {approx = true} : vector<8x1xf32> -> vector<8x1xf32>
    %61 = vector.broadcast %60 : vector<8x1xf32> to vector<8x8xf32>
    %62 = arith.mulf %59, %61 : vector<8x8xf32>
    %63 = arith.truncf %62 : vector<8x8xf32> to vector<8x8xbf16>
    %c0_30 = arith.constant 0 : index
    %c16_31 = arith.constant 16 : index
    %64 = vector.load %arg23[%c0_30, %c16_31] : memref<8x32xbf16, #tpu.memory_space<vmem>>, vector<8x8xbf16>
    tpu.vector_store %arg23[%c0_30, %c16_31], %63 {strides = array<i32>} : memref<8x32xbf16, #tpu.memory_space<vmem>>, vector<8x8xbf16>,
    %65 = arith.index_cast %4 : i32 to index
    %c24 = arith.constant 24 : index
    %66 = vector.load %arg20[%65, %c24] : memref<8x32xbf16, #tpu.memory_space<vmem>>, vector<8x8xbf16>
    %c0_32 = arith.constant 0 : index
    %c24_33 = arith.constant 24 : index
    %67 = vector.load %arg21[%c0_32, %c24_33] : memref<8x32xbf16, #tpu.memory_space<vmem>>, vector<8x8xbf16>
    %c0_34 = arith.constant 0 : index
    %c24_35 = arith.constant 24 : index
    %68 = vector.load %arg22[%c0_34, %c24_35] : memref<8x32xbf16, #tpu.memory_space<vmem>>, vector<8x8xbf16>
    %cst_36 = arith.constant dense<0.000000e+00> : vector<8x8xf32>
    %69 = tpu.matmul %66, %67, %cst_36 {dimension_numbers = #tpu.dot_dimension_numbers<[1], [1], [0], [0], [0, 0, 1, 0], [], []>} : vector<8x8xbf16>, vector<8x8xbf16>, vector<8x8xf32> -> vector<8x8xf32>
    %cst_37 = arith.constant dense<0xFF800000> : vector<8xf32>
    %70 = vector.multi_reduction <maximumf>, %69, %cst_37 [1] : vector<8x8xf32> to vector<8xf32>
    %71 = vector.shape_cast %70 : vector<8xf32> to vector<8x1xf32>
    %72 = vector.broadcast %71 : vector<8x1xf32> to vector<8x8xf32>
    %73 = arith.subf %69, %72 : vector<8x8xf32>
    %74 = math.exp %73 : vector<8x8xf32>
    %cst_38 = arith.constant dense<0.000000e+00> : vector<8xf32>
    %75 = vector.multi_reduction <add>, %74, %cst_38 [1] : vector<8x8xf32> to vector<8xf32>
    %76 = vector.shape_cast %75 : vector<8xf32> to vector<8x1xf32>
    %77 = arith.truncf %74 : vector<8x8xf32> to vector<8x8xbf16>
    %cst_39 = arith.constant dense<0.000000e+00> : vector<8x8xf32>
    %78 = tpu.matmul %77, %68, %cst_39 {dimension_numbers = #tpu.dot_dimension_numbers<[1], [0], [0], [1], [0, 0, 1, 1], [], []>} : vector<8x8xbf16>, vector<8x8xbf16>, vector<8x8xf32> -> vector<8x8xf32>
    %79 = tpu.reciprocal %76 {approx = true} : vector<8x1xf32> -> vector<8x1xf32>
    %80 = vector.broadcast %79 : vector<8x1xf32> to vector<8x8xf32>
    %81 = arith.mulf %78, %80 : vector<8x8xf32>
    %82 = arith.truncf %81 : vector<8x8xf32> to vector<8x8xbf16>
    %c0_40 = arith.constant 0 : index
    %c24_41 = arith.constant 24 : index
    %83 = vector.load %arg23[%c0_40, %c24_41] : memref<8x32xbf16, #tpu.memory_space<vmem>>, vector<8x8xbf16>
    tpu.vector_store %arg23[%c0_40, %c24_41], %82 {strides = array<i32>} : memref<8x32xbf16, #tpu.memory_space<vmem>>, vector<8x8xbf16>,
    %c0_42 = arith.constant 0 : index
    %c0_43 = arith.constant 0 : index
    %84 = vector.load %arg23[%c0_42, %c0_43] : memref<8x32xbf16, #tpu.memory_space<vmem>>, vector<8x32xbf16>
    %c0_44 = arith.constant 0 : index
    %c0_45 = arith.constant 0 : index
    %85 = vector.load %arg11[%c0_44, %c0_45] : memref<32x32xbf16, #tpu.memory_space<vmem>>, vector<32x32xbf16>
    %cst_46 = arith.constant dense<0.000000e+00> : vector<8x32xf32>
    %86 = tpu.matmul %84, %85, %cst_46 {dimension_numbers = #tpu.dot_dimension_numbers<[1], [0], [0], [1], [0, 0, 1, 1], [], []>} : vector<8x32xbf16>, vector<32x32xbf16>, vector<8x32xf32> -> vector<8x32xf32>
    %c0_47 = arith.constant 0 : index
    %c0_48 = arith.constant 0 : index
    %87 = vector.load %arg12[%c0_47, %c0_48] : memref<1x32xf32, #tpu.memory_space<vmem>>, vector<1x32xf32>
    %88 = vector.broadcast %87 : vector<1x32xf32> to vector<8x32xf32>
    %89 = arith.addf %86, %88 : vector<8x32xf32>
    %90 = arith.addf %7, %89 : vector<8x32xf32>
    %c0_49 = arith.constant 0 : index
    %c0_50 = arith.constant 0 : index
    %91 = vector.load %arg13[%c0_49, %c0_50] : memref<1x32xf32, #tpu.memory_space<vmem>>, vector<1x32xf32>
    %c0_51 = arith.constant 0 : index
    %c0_52 = arith.constant 0 : index
    %92 = vector.load %arg14[%c0_51, %c0_52] : memref<1x32xf32, #tpu.memory_space<vmem>>, vector<1x32xf32>
    %cst_53 = arith.constant dense<0.000000e+00> : vector<8xf32>
    %93 = vector.multi_reduction <add>, %90, %cst_53 [1] : vector<8x32xf32> to vector<8xf32>
    %94 = vector.shape_cast %93 : vector<8xf32> to vector<8x1xf32>
    %cst_54 = arith.constant 3.200000e+01 : f32
    %95 = vector.broadcast %cst_54 : f32 to vector<8x1xf32>
    %96 = arith.divf %94, %95 : vector<8x1xf32>
    %97 = vector.broadcast %96 : vector<8x1xf32> to vector<8x32xf32>
    %98 = arith.subf %90, %97 : vector<8x32xf32>
    %99 = arith.mulf %98, %98 : vector<8x32xf32>
    %cst_55 = arith.constant dense<0.000000e+00> : vector<8xf32>
    %100 = vector.multi_reduction <add>, %99, %cst_55 [1] : vector<8x32xf32> to vector<8xf32>
    %101 = vector.shape_cast %100 : vector<8xf32> to vector<8x1xf32>
    %cst_56 = arith.constant 3.200000e+01 : f32
    %102 = vector.broadcast %cst_56 : f32 to vector<8x1xf32>
    %103 = arith.divf %101, %102 : vector<8x1xf32>
    %cst_57 = arith.constant 9.99999974E-6 : f32
    %104 = vector.broadcast %cst_57 : f32 to vector<8x1xf32>
    %105 = arith.addf %103, %104 : vector<8x1xf32>
    %106 = math.rsqrt %105 : vector<8x1xf32>
    %107 = vector.broadcast %106 : vector<8x1xf32> to vector<8x32xf32>
    %108 = arith.mulf %98, %107 : vector<8x32xf32>
    %109 = vector.broadcast %91 : vector<1x32xf32> to vector<8x32xf32>
    %110 = arith.mulf %108, %109 : vector<8x32xf32>
    %111 = vector.broadcast %92 : vector<1x32xf32> to vector<8x32xf32>
    %112 = arith.addf %110, %111 : vector<8x32xf32>
    %113 = arith.truncf %112 : vector<8x32xf32> to vector<8x32xbf16>
    %c0_58 = arith.constant 0 : index
    %c0_59 = arith.constant 0 : index
    %114 = vector.load %arg15[%c0_58, %c0_59] : memref<32x128xbf16, #tpu.memory_space<vmem>>, vector<32x128xbf16>
    %cst_60 = arith.constant dense<0.000000e+00> : vector<8x128xf32>
    %115 = tpu.matmul %113, %114, %cst_60 {dimension_numbers = #tpu.dot_dimension_numbers<[1], [0], [0], [1], [0, 0, 1, 1], [], []>} : vector<8x32xbf16>, vector<32x128xbf16>, vector<8x128xf32> -> vector<8x128xf32>
    %c0_61 = arith.constant 0 : index
    %c0_62 = arith.constant 0 : index
    %116 = vector.load %arg16[%c0_61, %c0_62] : memref<1x128xf32, #tpu.memory_space<vmem>>, vector<1x128xf32>
    %117 = vector.broadcast %116 : vector<1x128xf32> to vector<8x128xf32>
    %118 = arith.addf %115, %117 : vector<8x128xf32>
    %cst_63 = arith.constant 5.000000e-01 : f32
    %119 = vector.broadcast %cst_63 : f32 to vector<8x128xf32>
    %120 = arith.mulf %119, %118 : vector<8x128xf32>
    %cst_64 = arith.constant 4.471500e-02 : f32
    %121 = vector.broadcast %cst_64 : f32 to vector<8x128xf32>
    %122 = arith.mulf %121, %118 : vector<8x128xf32>
    %123 = arith.mulf %122, %118 : vector<8x128xf32>
    %124 = arith.mulf %123, %118 : vector<8x128xf32>
    %125 = arith.addf %118, %124 : vector<8x128xf32>
    %cst_65 = arith.constant 0.797884583 : f32
    %126 = vector.broadcast %cst_65 : f32 to vector<8x128xf32>
    %127 = arith.mulf %126, %125 : vector<8x128xf32>
    %128 = math.tanh %127 : vector<8x128xf32>
    %cst_66 = arith.constant 1.000000e+00 : f32
    %129 = vector.broadcast %cst_66 : f32 to vector<8x128xf32>
    %130 = arith.addf %129, %128 : vector<8x128xf32>
    %131 = arith.mulf %120, %130 : vector<8x128xf32>
    %132 = arith.truncf %131 : vector<8x128xf32> to vector<8x128xbf16>
    %c0_67 = arith.constant 0 : index
    %c0_68 = arith.constant 0 : index
    %133 = vector.load %arg17[%c0_67, %c0_68] : memref<128x32xbf16, #tpu.memory_space<vmem>>, vector<128x32xbf16>
    %cst_69 = arith.constant dense<0.000000e+00> : vector<8x32xf32>
    %134 = tpu.matmul %132, %133, %cst_69 {dimension_numbers = #tpu.dot_dimension_numbers<[1], [0], [0], [1], [0, 0, 1, 1], [], []>} : vector<8x128xbf16>, vector<128x32xbf16>, vector<8x32xf32> -> vector<8x32xf32>
    %c0_70 = arith.constant 0 : index
    %c0_71 = arith.constant 0 : index
    %135 = vector.load %arg18[%c0_70, %c0_71] : memref<1x32xf32, #tpu.memory_space<vmem>>, vector<1x32xf32>
    %136 = vector.broadcast %135 : vector<1x32xf32> to vector<8x32xf32>
    %137 = arith.addf %134, %136 : vector<8x32xf32>
    %138 = arith.addf %90, %137 : vector<8x32xf32>
    %c0_72 = arith.constant 0 : index
    %c0_73 = arith.constant 0 : index
    %c0_74 = arith.constant 0 : index
    %139 = vector.load %arg19[%c0_72, %c0_73, %c0_74] : memref<1x8x32xf32, #tpu.memory_space<vmem>>, vector<1x8x32xf32>
    %140 = vector.shape_cast %139 : vector<1x8x32xf32> to vector<8x32xf32>
    %141 = vector.shape_cast %138 : vector<8x32xf32> to vector<1x8x32xf32>
    tpu.vector_store %arg19[%c0_72, %c0_73, %c0_74], %141 {strides = array<i32>} : memref<1x8x32xf32, #tpu.memory_space<vmem>>, vector<1x8x32xf32>,
    return
  }
  func.func @transform_0(%arg0: i32, %arg1: i32) -> (i32, i32, i32) {
    %c0_i32 = arith.constant 0 : i32
    %c0_i32_0 = arith.constant 0 : i32
    %c0_i32_1 = arith.constant 0 : i32
    return %arg0, %c0_i32, %c0_i32_0 : i32, i32, i32
  }
  func.func @transform_1(%arg0: i32, %arg1: i32) -> (i32, i32) {
    %c0_i32 = arith.constant 0 : i32
    %c0_i32_0 = arith.constant 0 : i32
    %c0_i32_1 = arith.constant 0 : i32
    return %c0_i32, %c0_i32_0 : i32, i32
  }
  func.func @transform_2(%arg0: i32, %arg1: i32) -> (i32, i32) {
    %c0_i32 = arith.constant 0 : i32
    %c0_i32_0 = arith.constant 0 : i32
    %c0_i32_1 = arith.constant 0 : i32
    return %c0_i32, %c0_i32_0 : i32, i32
  }
  func.func @transform_3(%arg0: i32, %arg1: i32) -> (i32, i32) {
    %c0_i32 = arith.constant 0 : i32
    %c0_i32_0 = arith.constant 0 : i32
    %c0_i32_1 = arith.constant 0 : i32
    return %c0_i32, %c0_i32_0 : i32, i32
  }
  func.func @transform_4(%arg0: i32, %arg1: i32) -> (i32, i32) {
    %c0_i32 = arith.constant 0 : i32
    %c0_i32_0 = arith.constant 0 : i32
    %c0_i32_1 = arith.constant 0 : i32
    return %c0_i32, %c0_i32_0 : i32, i32
  }
  func.func @transform_5(%arg0: i32, %arg1: i32) -> (i32, i32) {
    %c0_i32 = arith.constant 0 : i32
    %c0_i32_0 = arith.constant 0 : i32
    %c0_i32_1 = arith.constant 0 : i32
    return %c0_i32, %c0_i32_0 : i32, i32
  }
  func.func @transform_6(%arg0: i32, %arg1: i32) -> (i32, i32) {
    %c0_i32 = arith.constant 0 : i32
    %c0_i32_0 = arith.constant 0 : i32
    %c0_i32_1 = arith.constant 0 : i32
    return %c0_i32, %c0_i32_0 : i32, i32
  }
  func.func @transform_7(%arg0: i32, %arg1: i32) -> (i32, i32) {
    %c0_i32 = arith.constant 0 : i32
    %c0_i32_0 = arith.constant 0 : i32
    %c0_i32_1 = arith.constant 0 : i32
    return %c0_i32, %c0_i32_0 : i32, i32
  }
  func.func @transform_8(%arg0: i32, %arg1: i32) -> (i32, i32) {
    %c0_i32 = arith.constant 0 : i32
    %c0_i32_0 = arith.constant 0 : i32
    %c0_i32_1 = arith.constant 0 : i32
    return %c0_i32, %c0_i32_0 : i32, i32
  }
  func.func @transform_9(%arg0: i32, %arg1: i32) -> (i32, i32) {
    %c0_i32 = arith.constant 0 : i32
    %c0_i32_0 = arith.constant 0 : i32
    %c0_i32_1 = arith.constant 0 : i32
    return %c0_i32, %c0_i32_0 : i32, i32
  }
  func.func @transform_10(%arg0: i32, %arg1: i32) -> (i32, i32) {
    %c0_i32 = arith.constant 0 : i32
    %c0_i32_0 = arith.constant 0 : i32
    %c0_i32_1 = arith.constant 0 : i32
    return %c0_i32, %c0_i32_0 : i32, i32
  }
  func.func @transform_11(%arg0: i32, %arg1: i32) -> (i32, i32) {
    %c0_i32 = arith.constant 0 : i32
    %c0_i32_0 = arith.constant 0 : i32
    %c0_i32_1 = arith.constant 0 : i32
    return %c0_i32, %c0_i32_0 : i32, i32
  }
  func.func @transform_12(%arg0: i32, %arg1: i32) -> (i32, i32) {
    %c0_i32 = arith.constant 0 : i32
    %c0_i32_0 = arith.constant 0 : i32
    %c0_i32_1 = arith.constant 0 : i32
    return %c0_i32, %c0_i32_0 : i32, i32
  }
  func.func @transform_13(%arg0: i32, %arg1: i32) -> (i32, i32) {
    %c0_i32 = arith.constant 0 : i32
    %c0_i32_0 = arith.constant 0 : i32
    %c0_i32_1 = arith.constant 0 : i32
    return %c0_i32, %c0_i32_0 : i32, i32
  }
  func.func @transform_14(%arg0: i32, %arg1: i32) -> (i32, i32) {
    %c0_i32 = arith.constant 0 : i32
    %c0_i32_0 = arith.constant 0 : i32
    %c0_i32_1 = arith.constant 0 : i32
    return %c0_i32, %c0_i32_0 : i32, i32
  }
  func.func @transform_15(%arg0: i32, %arg1: i32) -> (i32, i32) {
    %c0_i32 = arith.constant 0 : i32
    %c0_i32_0 = arith.constant 0 : i32
    %c0_i32_1 = arith.constant 0 : i32
    return %c0_i32, %c0_i32_0 : i32, i32
  }
  func.func @transform_16(%arg0: i32, %arg1: i32) -> (i32, i32) {
    %c0_i32 = arith.constant 0 : i32
    %c0_i32_0 = arith.constant 0 : i32
    %c0_i32_1 = arith.constant 0 : i32
    return %c0_i32, %c0_i32_0 : i32, i32
  }
  func.func @transform_17(%arg0: i32, %arg1: i32) -> (i32, i32, i32) {
    %c0_i32 = arith.constant 0 : i32
    %c0_i32_0 = arith.constant 0 : i32
    return %arg0, %arg1, %c0_i32 : i32, i32, i32
  }
}

</mosaic_0001>

<bundles_post_ra>
// kernel: clip_encoder.3
= control target key start
LH: loop header
LB: loop body
LE: loop exit
PB: predicated region body
PF: predicated region fallthrough
CT: control target
= control target key end

     0   :  { %s2495_s0 = inlined_call_operand.vmem [shape: f32[2,8,32], index: 0, kind: input, shape index: {}]   ;;  %s2496_s1 = inlined_call_operand.vmem [shape: f32[1,32], index: 1, kind: input, shape index: {}]   ;;  %s2497_s2 = inlined_call_operand.vmem [shape: f32[1,32], index: 2, kind: input, shape index: {}]   ;;  %s2498_s3 = inlined_call_operand.vmem [shape: bf16[32,32], index: 3, kind: input, shape index: {}]   ;;  %s2499_s4 = inlined_call_operand.vmem [shape: f32[1,32], index: 4, kind: input, shape index: {}]   ;;  %s2500_s5 = inlined_call_operand.vmem [shape: bf16[32,32], index: 5, kind: input, shape index: {}]   ;;  %s2501_s6 = inlined_call_operand.vmem [shape: f32[1,32], index: 6, kind: input, shape index: {}]   ;;  %s2502_s7 = inlined_call_operand.vmem [shape: bf16[32,32], index: 7, kind: input, shape index: {}]   ;;  %s2503_s8 = inlined_call_operand.vmem [shape: f32[1,32], index: 8, kind: input, shape index: {}]   ;;  %s2504_s9 = inlined_call_operand.vmem [shape: bf16[32,32], index: 9, kind: input, shape index: {}]   ;;  %s2505_s10 = inlined_call_operand.vmem [shape: f32[1,32], index: 10, kind: input, shape index: {}]   ;;  %s2506_s11 = inlined_call_operand.vmem [shape: f32[1,32], index: 11, kind: input, shape index: {}]   ;;  %s2507_s12 = inlined_call_operand.vmem [shape: f32[1,32], index: 12, kind: input, shape index: {}]   ;;  %s2508_s13 = inlined_call_operand.vmem [shape: bf16[32,128], index: 13, kind: input, shape index: {}]   ;;  %s2509_s14 = inlined_call_operand.vmem [shape: f32[1,128], index: 14, kind: input, shape index: {}]   ;;  %s2510_s15 = inlined_call_operand.vmem [shape: bf16[128,32], index: 15, kind: input, shape index: {}]   ;;  %s2511_s16 = inlined_call_operand.vmem [shape: f32[1,32], index: 16, kind: input, shape index: {}]   ;;  %s2512_s17 = inlined_call_operand.hbm [shape: f32[2,8,32], index: 17, kind: output, shape index: {}]  }
   0x1   :  { %2516 = sst [smem:[#allocation12_spill]] %s2495_s0 }
   0x2   :  { %2517 = sst [smem:[#allocation13_spill]] %s2496_s1 }
   0x3   :  { %2518 = sst [smem:[#allocation14_spill]] %s2497_s2 }
   0x4   :  { %2519 = sst [smem:[#allocation15_spill]] %s2498_s3 }
   0x5   :  { %2520 = sst [smem:[#allocation16_spill]] %s2499_s4 }
   0x6   :  { %22 = vsyncpa [#allocation7], 0 }
   0x7   :  { %24 = vsyncpa [#allocation7 + $0x1], 0  ;;  %s2189_s24 = smov 0   ;;  %s2191_s25 = smov 0  }
   0x8   :  { %s2193_s26 = smov 0   ;;  %s2195_s27 = smov 0  }
   0x9   :  { %s2197_s28 = smov 0   ;;  %s2199_s29 = smov 0  }
   0xa LB: > { %2521 = sst [smem:[#allocation9_spill]] %s2068_s24  ;;  %s1683_s0 = sadd.s32 4294967295, %s2088_s29   ;;  %s2088_s29 = sphi %s2199_s29, %s30_s29   ;;  %s2084_s28 = sphi %s2197_s28, %s2533_s28   ;;  %s2080_s27 = sphi %s2195_s27, %s2532_s27   ;;  %s2076_s26 = sphi %s2193_s26, %s2536_s26   ;;  %s2072_s25 = sphi %s2191_s25, %s2535_s25   ;;  %s2068_s24 = sphi %s2189_s24, %s2534_s24  }
   0xb   : > { %2522 = sst [smem:[#allocation10_spill]] %s2084_s28  ;;  %s1684_s30 = sadd.s32 4294967294, %s2088_s29  }
   0xc   : > { %s42_s18 = sadd.s32 1, %s2084_s28  ;;  %s413_s19 = sadd.s32 1, %s2076_s26 }
   0xd   : > { %p44_p0 = scmp.ge.s32.totalorder %s42_s18, 2  ;;  %p423_p1 = scmp.ne.s32.totalorder %s2076_s26, %s2072_s25 }
   0xe   : > { %p424_p2 = scmp.eq.s32.totalorder %s1683_s0, 1  ;;  %p429_p3 = scmp.ne.s32.totalorder %s2072_s25, %s2068_s24 }
   0xf   : > { %s2538_s18 = smov (%p44_p0, %s42_s18), 0  ;;  %p430_p5 = scmp.eq.s32.totalorder %s1684_s30, 1 }
  0x10   : > { %2523 = sst [smem:[#allocation11_spill]] %s2538_s18  ;;  %p2229_p4 = por %p424_p2, %p423_p1 }
  0x11   : > { %s408_s20 = ssub.s32 %s2084_s28, %s2538_s18  ;;  %p1687_p6 = scmp.ge.s32.totalorder %s2088_s29, 1 }
  0x12   : > { %p411_p7 = scmp.eq.s32.totalorder %s408_s20, 0  ;;  %p2236_p8 = por %p430_p5, %p429_p3 }
  0x13   : > { %p503_p9 = scmp.lt.s32.totalorder %s2088_s29, 3 }
  0x14   : > { %s2242_s22 = scalar_select %p411_p7, %s2076_s26, %s413_s19  }
  0x15   : > { %p504_p10 = pnand %p1687_p6, %p503_p9 }
  0x16   : > { %p554_p11 = scmp.lt.s32.totalorder (!%p504_p10), %s2080_s27, 1  ;;  %vm566_vm0 = vcmask (!%p504_p10), 261120   ;;  %s2526_s18 = sld [smem:[#allocation12_spill]] (!%p504_p10)  ;;  %v2090_v8 = vmov (!%p504_p10), 0.0   ;;  %vm2091_vm1 = vmmov (!%p504_p10), 0   ;;  %v1963_v19 = vld [vmem:[%s2500_s5] sm:$0xff] (!%p504_p10)  }
  0x17   : > { %507 = sbr.rel (%p504_p10) target bundleno = 2436 (0x984), region = 88  ;;  %s2527_s3 = sld [smem:[#allocation15_spill]] (!%p504_p10)  ;;  %1790 = vmatprep.subr.bf16.mxu0 (!%p504_p10), %v2090_v8  ;;  %1794 = vmatprep.mubr.msk.bf16.mxu0 (!%p504_p10), %vm2091_vm1, %v2090_v8  ;;  %v1964_v21 = vld [vmem:[%s2500_s5 + $0x8] sm:$0xff] (!%p504_p10)   ;;  %v1965_v22 = vld [vmem:[%s2502_s7] sm:$0xff] (!%p504_p10)   ;;  %vm663_vm2 = vcmask (!%p504_p10), 257024   ;;  %vm805_vm3 = vcmask (!%p504_p10), 64512  }
  0x18   : > { %1814 = vmatprep.subr.bf16.mxu1 (!%p504_p10), %v2090_v8  ;;  %1816 = vmatprep.mubr.msk.bf16.mxu1 (!%p504_p10), %vm2091_vm1, %v2090_v8  ;;  %s2529_s2 = sld [smem:[#allocation14_spill]] (!%p504_p10)  ;;  %v1966_v23 = vld [vmem:[%s2502_s7 + $0x8] sm:$0xff] (!%p504_p10)   ;;  %s2530_s4 = sld [smem:[#allocation16_spill]] (!%p504_p10)  ;;  %v1696_v31 = vld [vmem:[%s2501_s6] ss:$0 sm:$0xff] (!%p504_p10)  ;;  %vm865_vm4 = vcmask (!%p504_p10), 1043456  }
  0x19   : > { %v1700_v38 = vld [vmem:[%s2503_s8] ss:$0 sm:$0xff] (!%p504_p10)  ;;  %s2094_s30 = smov (!%p504_p10), 104   ;;  %vm912_vm5 = vcmask (!%p504_p10), 60416   ;;  %vm1043_vm6 = vcmask (!%p504_p10), 126016   ;;  %vm1174_vm7 = vcmask (!%p504_p10), 191616  }
  0x1a   : > { %vm1305_vm8 = vcmask (!%p504_p10), 257216   ;;  %s1744_s24 = sshll.u32 (!%p504_p10), %s2080_s27, 7  ;;  %s2098_s19 = smov (!%p504_p10), [#allocation6]  }
  0x1b   : > { %s2014_s20 = sshll.u32 (!%p504_p10), %s2098_s19, 4  ;;  %s2015_s20 = int_to_ptr.vmem [resolvable:$false] %s2014_s20 }
  0x1d   : > { %v1961_v7 = vld [vmem:[%s2527_s3] sm:$0xff] (!%p504_p10)   ;;  %v1962_v9 = vld [vmem:[%s2527_s3 + $0x8] sm:$0xff] (!%p504_p10)   ;;  %s2095_s3 = smov (!%p504_p10), 8  }
  0x1e   : > { %s555_s23 = scalar_select %p554_p11, %s2080_s27, 1  ;;  %1791 = vmatpush3.bf16.msra.mxu0 %v1961_v7  ;;  %v1691_v16 = vld [vmem:[%s2529_s2] ss:$0 sm:$0xff] }
  0x1f   : > { %1792 = vmatprep.subr.bf16.mxu0 %v2090_v8  ;;  %v1692_v24 = vld [vmem:[%s2530_s4] ss:$0 sm:$0xff]  ;;  %s2447_s2 = scalar_lea.hbm %s2512_s17, %s1744_s24  ;;  %s2016_s4 = scalar_lea.vmem %s2015_s20, 256 }
  0x20   : > { %s1689_s0 = sshll.u32 %s555_s23, 3  ;;  %s2092_s23 = smov 112  }
  0x21   : > { %s557_s28 = scalar_lea.vmem %s2526_s18, %s1689_s0  ;;  %s2528_s0 = sld [smem:[#allocation13_spill]] }
  0x22   : > { %v2249_v0 = vld [vmem:[%s557_s28] sm:$0xff]  ;;  %1793 = vmatpush3.bf16.msra.mxu0 %v1962_v9  ;;  %s2096_s18 = smov 16  }
  0x23   : > { %v567_v1 = vsel %vm566_vm0, %v2249_v0, 0.0  ;;  %1798 = vmatprep.subr.bf16.mxu0 %v2090_v8 }
  0x24   : > { %568 = vadd.xlane.f32.xlu0 %v567_v1 }
  0x27   : > { %v1690_v14 = vld [vmem:[%s2528_s0] ss:$0 sm:$0xff]  ;;  %s2093_s0 = smov 120  }
  0xb1   : > { %v569_v2 = vpop.xlane.xlu0 %568 }
  0xb2   : > { %v571_v3 = vmul.f32 0.03125, %v569_v2 }
  0xb4   : > { %v572_v4 = vsub.f32 %v2249_v0, %v571_v3 }
  0xb6   : > { %v573_v5 = vmul.f32 %v572_v4, %v572_v4 }
  0xb8   : > { %v574_v6 = vsel %vm566_vm0, %v573_v5, 0.0 }
  0xb9   : > { %575 = vadd.xlane.f32.xlu0 %v574_v6 }
 0x146   : > { %v576_v10 = vpop.xlane.xlu0 %575 }
 0x147   : > { %v577_v11 = vmul.f32 0.03125, %v576_v10 }
 0x149   : > { %v578_v12 = vadd.f32 1e-05, %v577_v11 }
 0x14b   : > { %1988 = vrsqrt.f32 %v578_v12 }
 0x155   : > { %v1989_v13 = vpop.eup %1988 }
 0x156   : > { %v580_v15 = vmul.f32 %v1989_v13, %v572_v4 }
 0x158   : > { %v587_v17 = vmul.f32 %v1690_v14, %v580_v15 }
 0x15a   : > { %v594_v18 = vadd.f32 %v1691_v16, %v587_v17 }
 0x15c   : > { %v595_v20 = vpack.c.bf16 %v594_v18, %v594_v18 }
 0x15e   : > { %1795 = vmatmul.mubr.msk.bf16.vlgmr.msra.gmra.mrb[0].mxu0 %vm566_vm0, %v595_v20 }
 0x15f   : > { %1799 = vmatpush3.bf16.msra.mxu0 %v1963_v19  ;;  %1802 = vmatprep.mubr.msk.bf16.mxu0 %vm2091_vm1, %v2090_v8 }
 0x160   : > { %1800 = vmatprep.subr.bf16.mxu0 %v2090_v8 }
 0x163   : > { %1801 = vmatpush3.bf16.msra.mxu0 %v1964_v21 }
 0x164   : > { %1806 = vmatprep.subr.bf16.mxu0 %v2090_v8 }
 0x166   : > { %1803 = vmatmul.mubr.msk.bf16.vlgmr.msra.gmra.mrb[4].mxu0 %vm566_vm0, %v595_v20 }
 0x167   : > { %1807 = vmatpush3.bf16.msra.mxu0 %v1965_v22  ;;  %1810 = vmatprep.mubr.msk.bf16.mxu0 %vm2091_vm1, %v2090_v8 }
 0x168   : > { %1808 = vmatprep.subr.bf16.mxu0 %v2090_v8 }
 0x16b   : > { %1809 = vmatpush3.bf16.msra.mxu0 %v1966_v23 }
 0x16c   : > { %1820 = vmatprep.subr.bf16.mxu0 %v2090_v8 }
 0x16e   : > { %1811 = vmatmul.mubr.msk.bf16.vlgmr.msra.gmra.mrb[8].mxu0 %vm566_vm0, %v595_v20 }
 0x16f   : > { %1822 = vmatprep.mubr.msk.bf16.mxu0 %vm2091_vm1, %v2090_v8 }
 0x231   : > { %v656_v25 = vpop.f32.mrb[0].mxu0 }
 0x232   : > { %v657_v26 = vadd.f32 %v1692_v24, %v656_v25  ;;  %v1796_v27 = vpop.f32.mrb[1].mxu0 }
 0x233   : > { %v659_v28 = vpop.f32.mrb[2].mxu0 }
 0x234   : > { %v662_v29 = vpack.c.bf16 %v657_v26, %v657_v26  ;;  %v1797_v30 = vpop.f32.mrb[3].mxu0 }
 0x236   : > { %664 = vst.msk [vmem:[#allocation2] sm:$0xf] %vm663_vm2, %v662_v29 }
 0x239   : > { %v722_v32 = vpop.f32.mrb[4].mxu0 }
 0x23a   : > { %v723_v33 = vadd.f32 %v1696_v31, %v722_v32  ;;  %v1804_v34 = vpop.f32.mrb[5].mxu0 }
 0x23b   : > { %v725_v35 = vpop.f32.mrb[6].mxu0 }
 0x23c   : > { %v728_v36 = vpack.c.bf16 %v723_v33, %v723_v33  ;;  %v1805_v37 = vpop.f32.mrb[7].mxu0 }
 0x23d   : > { %v1969_v49 = vld [vmem:[#allocation2] ss:$0 sps:$4 sm:$0xff]  }
 0x23e   : > { %729 = vst.msk [vmem:[#allocation3] sm:$0xf] %vm663_vm2, %v728_v36  ;;  %v802_v50 = vld [vmem:[#allocation2] sm:$0xf] }
 0x23f   : > { %v1970_v53 = vld [vmem:[#allocation2] ss:$0 sps:$4 sm:$0xff]  }
 0x240   : > { %v1972_v55 = vld [vmem:[#allocation2] ss:$0 sps:$4 sm:$0xff]  }
 0x241   : > { %v787_v39 = vpop.f32.mrb[8].mxu0 }
 0x242   : > { %v788_v40 = vadd.f32 %v1700_v38, %v787_v39  ;;  %v1812_v41 = vpop.f32.mrb[9].mxu0 }
 0x243   : > { %v790_v42 = vpop.f32.mrb[10].mxu0 }
 0x244   : > { %v793_v43 = vpack.c.bf16 %v788_v40, %v788_v40  ;;  %v1813_v44 = vpop.f32.mrb[11].mxu0 }
 0x245   : > { %v803_v45 = vld [vmem:[#allocation3] sm:$0xf] }
 0x246   : > { %v1967_v46 = vld [vmem:[#allocation3] ss:$0 sps:$4 sm:$0xff]   ;;  %794 = vst.msk [vmem:[#allocation4] sm:$0xf] %vm663_vm2, %v793_v43  ;;  %v810_v47 = vsel %vm805_vm3, %v803_v45, 0 }
 0x247   : > { %v1968_v48 = vld [vmem:[#allocation3] ss:$0 sps:$4 sm:$0xff]   ;;  %1815 = vmatpush3.bf16.xpose.msra.mxu1 %v810_v47  ;;  %1056 = vrot.lane.b32.xlu0 %v1967_v46, %s2092_s23 }
 0x248   : > { %925 = vrot.lane.b32.xlu1 %v1968_v48, %s2093_s0  ;;  %1826 = vmatprep.subr.bf16.mxu1 %v2090_v8  ;;  %v1971_v54 = vld [vmem:[#allocation3] ss:$0 sps:$4 sm:$0xff]  }
 0x24c   : > { %920 = vrot.lane.b32.xlu1 %v1969_v49, %s2093_s0 }
 0x24d   : > { %v804_v51 = vld [vmem:[#allocation4] sm:$0xf] }
 0x24e   : > { %1817 = vmatmul.mubr.msk.bf16.vlgmr.msra.gmra.mrb[0].mxu1 %vm805_vm3, %v802_v50  ;;  %v867_v52 = vsel %vm865_vm4, %v804_v51, 0  ;;  %v1973_v7 = vld [vmem:[#allocation4] ss:$0 sps:$4 sm:$0xff]  }
 0x24f   : > { %1821 = vmatpush3.bf16.msra.mxu0 %v867_v52  ;;  %1828 = vmatprep.mubr.msk.bf16.mxu1 %vm2091_vm1, %v2090_v8  ;;  %v1974_v24 = vld [vmem:[#allocation4] ss:$0 sps:$4 sm:$0xff]  }
 0x250   : > { %1051 = vrot.lane.b32.xlu1 %v1970_v53, %s2092_s23  ;;  %1832 = vmatprep.subr.bf16.mxu0 %v2090_v8  ;;  %v1975_v28 = vld [vmem:[#allocation4] ss:$0 sps:$4 sm:$0xff]  }
 0x254   : > { %1187 = vrot.lane.b32.xlu1 %v1971_v54, %s2094_s30 }
 0x258   : > { %1182 = vrot.lane.b32.xlu1 %v1972_v55, %s2094_s30 }
 0x2b9   : > { %v1057_v59 = vpop.permute.xlu0 %1056 }
 0x2ba   : > { %v926_v56 = vpop.permute.xlu1 %925  ;;  %v1062_v61 = vsel %vm805_vm3, %v1057_v59, 0 }
 0x2bb   : > { %v931_v57 = vsel %vm805_vm3, %v926_v56, 0 }
 0x2bc   : > { %1827 = vmatpush3.bf16.xpose.msra.mxu1 %v931_v57 }
 0x2bd   : > { %1838 = vmatprep.subr.bf16.mxu1 %v2090_v8 }
 0x2be   : > { %v921_v58 = vpop.permute.xlu1 %920 }
 0x2c2   : > { %v1052_v60 = vpop.permute.xlu1 %1051 }
 0x2c3   : > { %1829 = vmatmul.mubr.msk.bf16.vlgmr.msra.gmra.mrb[4].mxu1 %vm805_vm3, %v921_v58 }
 0x2c4   : > { %1839 = vmatpush3.bf16.xpose.msra.mxu1 %v1062_v61  ;;  %1840 = vmatprep.mubr.msk.bf16.mxu1 %vm2091_vm1, %v2090_v8 }
 0x2c5   : > { %1850 = vmatprep.subr.bf16.mxu1 %v2090_v8 }
 0x2c6   : > { %v1188_v62 = vpop.permute.xlu1 %1187 }
 0x2c7   : > { %v1193_v63 = vsel %vm805_vm3, %v1188_v62, 0 }
 0x2ca   : > { %v1183_v1 = vpop.permute.xlu1 %1182 }
 0x2cb   : > { %1841 = vmatmul.mubr.msk.bf16.vlgmr.msra.gmra.mrb[8].mxu1 %vm805_vm3, %v1052_v60 }
 0x2cc   : > { %1851 = vmatpush3.bf16.xpose.msra.mxu1 %v1193_v63  ;;  %1852 = vmatprep.mubr.msk.bf16.mxu1 %vm2091_vm1, %v2090_v8 }
 0x2cd   : > { %1862 = vmatprep.subr.bf16.mxu1 %v2090_v8 }
 0x2d3   : > { %1853 = vmatmul.mubr.msk.bf16.vlgmr.msra.gmra.mrb[12].mxu1 %vm805_vm3, %v1183_v1 }
 0x2d4   : > { %1866 = vmatprep.mubr.msk.bf16.mxu1 %vm2091_vm1, %v2090_v8 }
 0x321   : > { %v846_v2 = vpop.f32.mrb[0].mxu1 }
 0x322   : > { %v1818_v3 = vpop.f32.mrb[1].mxu1  ;;  %v852_v4 = vsel %vm805_vm3, %v846_v2, -inf }
 0x323   : > { %853 = vmax.xlane.f32.xlu1 %v852_v4  ;;  %v849_v5 = vpop.f32.mrb[2].mxu1 }
 0x324   : > { %v1819_v6 = vpop.f32.mrb[3].mxu1 }
 0x334   : > { %1117 = vrot.lane.b32.xlu1 %v1973_v7, %s2092_s23  ;;  %s2097_s23 = smov 24  }
 0x396   : > { %v967_v9 = vpop.f32.mrb[4].mxu1 }
 0x397   : > { %v1830_v10 = vpop.f32.mrb[5].mxu1  ;;  %v973_v11 = vsel %vm805_vm3, %v967_v9, -inf }
 0x398   : > { %974 = vmax.xlane.f32.xlu0 %v973_v11  ;;  %v970_v12 = vpop.f32.mrb[6].mxu1 }
 0x399   : > { %v1831_v13 = vpop.f32.mrb[7].mxu1 }
 0x39e   : > { %v1098_v14 = vpop.f32.mrb[8].mxu1 }
 0x39f   : > { %v1842_v15 = vpop.f32.mrb[9].mxu1  ;;  %v1104_v16 = vsel %vm805_vm3, %v1098_v14, -inf }
 0x3a0   : > { %v1101_v17 = vpop.f32.mrb[10].mxu1  ;;  %1105 = vmax.xlane.f32.xlu1 %v1104_v16 }
 0x3a1   : > { %v1843_v18 = vpop.f32.mrb[11].mxu1 }
 0x3a2   : > { %v1977_v18 = vld [vmem:[%s2504_s9 + $0x8] sm:$0xff]  }
 0x3a6   : > { %v1229_v19 = vpop.f32.mrb[12].mxu1 }
 0x3a7   : > { %v1854_v20 = vpop.f32.mrb[13].mxu1  ;;  %v1235_v21 = vsel %vm805_vm3, %v1229_v19, -inf }
 0x3a8   : > { %v1232_v22 = vpop.f32.mrb[14].mxu1  ;;  %1236 = vmax.xlane.f32.xlu1 %v1235_v21 }
 0x3a9   : > { %v1855_v23 = vpop.f32.mrb[15].mxu1 }
 0x3ae   : > { %986 = vrot.lane.b32.xlu0 %v1974_v24, %s2093_s0 }
 0x3b0   : > { %v854_v25 = vpop.xlane.xlu1 %853 }
 0x3b1   : > { %v855_v26 = vsub.f32 %v846_v2, %v854_v25 }
 0x3b3   : > { %v856_v27 = vmul.f32 1.442695, %v855_v26 }
 0x3b4   : > { %v1118_v34 = vpop.permute.xlu1 %1117 }
 0x3b5   : > { %1990 = vpow2.f32 %v856_v27  ;;  %v1123_v45 = vsel %vm865_vm4, %v1118_v34, 0 }
 0x3b9   : > { %1248 = vrot.lane.b32.xlu1 %v1975_v28, %s2094_s30  ;;  %s551_s30 = sand.u32 1, %s2072_s25  }
 0x3ba   : > { %s1597_s27 = scalar_lea.sflag [#allocation7], %s551_s30 }
 0x3bf   : > { %v1991_v29 = vpop.eup %1990 }
 0x3c0   : > { %v861_v30 = vpack.c.bf16 %v1991_v29, %v1991_v29  ;;  %v858_v55 = vsel %vm805_vm3, %v1991_v29, 0.0 }
 0x3c2   : > { %1823 = vmatmul.mubr.msk.bf16.vlgmr.msra.gmra.mrb[12].mxu0 %vm805_vm3, %v861_v30 }
 0x3c3   : > { %1834 = vmatprep.mubr.msk.bf16.mxu0 %vm2091_vm1, %v2090_v8 }
 0x425   : > { %v975_v31 = vpop.xlane.xlu0 %974 }
 0x426   : > { %v976_v32 = vsub.f32 %v967_v9, %v975_v31 }
 0x428   : > { %v977_v33 = vmul.f32 1.442695, %v976_v32  ;;  %v1724_v32 = vld [vmem:[%s2505_s10] ss:$0 sm:$0xff] }
 0x429   : > { %v987_v35 = vpop.permute.xlu0 %986 }
 0x42a   : > { %1992 = vpow2.f32 %v977_v33  ;;  %v992_v36 = vsel %vm865_vm4, %v987_v35, 0 }
 0x42b   : > { %1833 = vmatpush3.bf16.msra.mxu0 %v992_v36 }
 0x42c   : > { %1844 = vmatprep.subr.bf16.mxu0 %v2090_v8 }
 0x42d   : > { %v1106_v37 = vpop.xlane.xlu1 %1105 }
 0x42e   : > { %v1107_v38 = vsub.f32 %v1098_v14, %v1106_v37  ;;  %v1976_v14 = vld [vmem:[%s2504_s9] sm:$0xff]  }
 0x42f   : > { %1863 = vmatpush3.bf16.msra.mxu1 %v1976_v14 }
 0x430   : > { %v1108_v39 = vmul.f32 1.442695, %v1107_v38  ;;  %1864 = vmatprep.subr.bf16.mxu1 %v2090_v8 }
 0x432   : > { %1994 = vpow2.f32 %v1108_v39 }
 0x433   : > { %1865 = vmatpush3.bf16.msra.mxu1 %v1977_v18 }
 0x434   : > { %v1993_v40 = vpop.eup %1992  ;;  %1878 = vmatprep.subr.bf16.mxu1 %v2090_v8 }
 0x435   : > { %v1237_v41 = vpop.xlane.xlu1 %1236  ;;  %v979_v42 = vsel %vm805_vm3, %v1993_v40, 0.0  ;;  %v982_v43 = vpack.c.bf16 %v1993_v40, %v1993_v40 }
 0x436   : > { %v1238_v44 = vsub.f32 %v1229_v19, %v1237_v41  ;;  %980 = vadd.xlane.f32.xlu0 %v979_v42 }
 0x437   : > { %1835 = vmatmul.mubr.msk.bf16.vlgmr.msra.gmra.mrb[16].mxu0 %vm805_vm3, %v982_v43 }
 0x438   : > { %v1239_v46 = vmul.f32 1.442695, %v1238_v44  ;;  %1845 = vmatpush3.bf16.msra.mxu0 %v1123_v45  ;;  %1846 = vmatprep.mubr.msk.bf16.mxu0 %vm2091_vm1, %v2090_v8  ;;  %v1978_v45 = vld [vmem:[%s2508_s13] sm:$0xff]  }
 0x439   : > { %1856 = vmatprep.subr.bf16.mxu0 %v2090_v8  ;;  %v1249_v48 = vpop.permute.xlu1 %1248 }
 0x43a   : > { %1996 = vpow2.f32 %v1239_v46  ;;  %v1254_v51 = vsel %vm865_vm4, %v1249_v48, 0  ;;  %v1980_v46 = vld [vmem:[%s2510_s15] sm:$0xff]  }
 0x43c   : > { %v1995_v47 = vpop.eup %1994 }
 0x43d   : > { %v1110_v49 = vsel %vm805_vm3, %v1995_v47, 0.0  ;;  %v1113_v50 = vpack.c.bf16 %v1995_v47, %v1995_v47 }
 0x43e   : > { %1111 = vadd.xlane.f32.xlu1 %v1110_v49 }
 0x43f   : > { %1847 = vmatmul.mubr.msk.bf16.vlgmr.msra.gmra.mrb[20].mxu0 %vm805_vm3, %v1113_v50 }
 0x440   : > { %1857 = vmatpush3.bf16.msra.mxu0 %v1254_v51  ;;  %1858 = vmatprep.mubr.msk.bf16.mxu0 %vm2091_vm1, %v2090_v8  ;;  %v1728_v51 = vld [vmem:[%s2506_s11] ss:$0 sm:$0xff] }
 0x441   : > { %1870 = vmatprep.subr.bf16.mxu0 %v2090_v8 }
 0x444   : > { %v1997_v52 = vpop.eup %1996 }
 0x445   : > { %v1241_v53 = vsel %vm805_vm3, %v1997_v52, 0.0  ;;  %v1244_v54 = vpack.c.bf16 %v1997_v52, %v1997_v52 }
 0x446   : > { %1242 = vadd.xlane.f32.xlu0 %v1241_v53  ;;  %v1729_v53 = vld [vmem:[%s2507_s12] ss:$0 sm:$0xff] }
 0x447   : > { %1859 = vmatmul.mubr.msk.bf16.vlgmr.msra.gmra.mrb[24].mxu0 %vm805_vm3, %v1244_v54 }
 0x448   : > { %1874 = vmatprep.mubr.msk.bf16.mxu0 %vm2091_vm1, %v2090_v8  ;;  %1871 = vmatpush3.bf16.msra.mxu0 %v1978_v45 }
 0x449   : > { %1872 = vmatprep.subr.bf16.mxu0 %v2090_v8 }
 0x44a   : > { %859 = vadd.xlane.f32.xlu0 %v858_v55 }
 0x495   : > { %v903_v56 = vpop.f32.mrb[12].mxu0 }
 0x496   : > { %v1824_v57 = vpop.f32.mrb[13].mxu0 }
 0x497   : > { %v906_v58 = vpop.f32.mrb[14].mxu0  ;;  %v1981_v57 = vld [vmem:[%s2510_s15 + $0x8] sm:$0xff]  }
 0x498   : > { %v1825_v59 = vpop.f32.mrb[15].mxu0  ;;  %v1982_v58 = vld [vmem:[%s2510_s15 + $0x10] sm:$0xff]  }
 0x499   : > { %v1983_v59 = vld [vmem:[%s2510_s15 + $0x18] sm:$0xff]  }
 0x4c3   : > { %v981_v60 = vpop.xlane.xlu0 %980 }
 0x4cb   : > { %v1112_v3 = vpop.xlane.xlu1 %1111 }
 0x4d3   : > { %v1243_v61 = vpop.xlane.xlu0 %1242 }
 0x4d7   : > { %v860_v62 = vpop.xlane.xlu0 %859 }
 0x4d8   : > { %1998 = vrcp.f32 %v860_v62  ;;  %v1986_v62 = vld [vmem:[%s2510_s15 + $0x30] sm:$0xff]  }
 0x4d9   : > { %2000 = vrcp.f32 %v981_v60  ;;  %v1984_v60 = vld [vmem:[%s2510_s15 + $0x20] sm:$0xff]  }
 0x4da   : > { %2002 = vrcp.f32 %v1112_v3 }
 0x4db   : > { %2004 = vrcp.f32 %v1243_v61  ;;  %v1985_v61 = vld [vmem:[%s2510_s15 + $0x28] sm:$0xff]  }
 0x4e2   : > { %v1999_v63 = vpop.eup %1998 }
 0x4e3   : > { %v910_v1 = vmul.f32 %v1999_v63, %v903_v56  ;;  %v2001_v4 = vpop.eup %2000  ;;  %v1987_v63 = vld [vmem:[%s2510_s15 + $0x38] sm:$0xff]  }
 0x4e4   : > { %v2003_v12 = vpop.eup %2002 }
 0x4e5   : > { %v911_v2 = vpack.c.bf16 %v910_v1, %v910_v1  ;;  %v2005_v21 = vpop.eup %2004  ;;  %v1730_v1 = vld [vmem:[%s2509_s14] ss:$0 sm:$0xff] }
 0x4e7   : > { %913 = vst.msk [vmem:[#allocation5] sm:$0xf] %vm912_vm5, %v911_v2 }
 0x50a   : > { %v1028_v5 = vpop.f32.mrb[16].mxu0 }
 0x50b   : > { %v1035_v6 = vmul.f32 %v2001_v4, %v1028_v5  ;;  %v1836_v7 = vpop.f32.mrb[17].mxu0 }
 0x50c   : > { %v1031_v9 = vpop.f32.mrb[18].mxu0 }
 0x50d   : > { %v1747_v10 = vpack.c.bf16 %v1035_v6, %v1035_v6  ;;  %v1837_v11 = vpop.f32.mrb[19].mxu0 }
 0x50f   : > { %1040 = vrot.lane.b32.xlu1 %v1747_v10, %s2095_s3  ;;  %s1688_s3 = sshll.u32 %s551_s30, 3 }
 0x510   : > { %s553_s28 = scalar_lea.vmem [#allocation6], %s1688_s3 }
 0x512   : > { %v1159_v13 = vpop.f32.mrb[20].mxu0 }
 0x513   : > { %v1166_v15 = vmul.f32 %v2003_v12, %v1159_v13  ;;  %v1848_v16 = vpop.f32.mrb[21].mxu0 }
 0x514   : > { %v1162_v17 = vpop.f32.mrb[22].mxu0 }
 0x515   : > { %v1748_v19 = vpack.c.bf16 %v1166_v15, %v1166_v15  ;;  %v1849_v20 = vpop.f32.mrb[23].mxu0  ;;  %v1734_v17 = vld [vmem:[%s2511_s16] ss:$0 sm:$0xff] }
 0x517   : > { %1171 = vrot.lane.b32.xlu0 %v1748_v19, %s2096_s18  ;;  %s1611_s18 = sshll.u32 %s553_s28, 4  ;;  %s2449_s18 = int_to_ptr.vmem [resolvable:$true] %s1611_s18 }
 0x518   : > { %s2010_s3 = scalar_lea.vmem %s2449_s18, 128  ;;  %p2017_p1 = scmp.lt.s32.totalorder %s2449_s18, %s2015_s20 }
 0x519   : > { %p2011_p12 = scmp.ne.s32.totalorder %s2449_s18, %s2010_s3  ;;  %p2018_p2 = scmp.lt.s32.totalorder %s2016_s4, %s2010_s3 }
 0x51a   : > { %v1290_v22 = vpop.f32.mrb[24].mxu0 }
 0x51b   : > { %v1297_v23 = vmul.f32 %v2005_v21, %v1290_v22  ;;  %v1860_v24 = vpop.f32.mrb[25].mxu0  ;;  %p2012_p13 = pnand %p2011_p12, %p2229_p4  ;;  %p2019_p3 = por %p2018_p2, %p2017_p1 }
 0x51c   : > { %v1293_v25 = vpop.f32.mrb[26].mxu0 }
 0x51d   : > { %v1749_v26 = vpack.c.bf16 %v1297_v23, %v1297_v23  ;;  %v1861_v27 = vpop.f32.mrb[27].mxu0  ;;  %p2013_p0 = pneg %p2012_p13 }
 0x51f   : > { %1302 = vrot.lane.b32.xlu1 %v1749_v26, %s2097_s23  ;;  %p2020_p5 = pnand %p2019_p3, %p2013_p0 }
 0x581   : > { %v1041_v28 = vpop.permute.xlu1 %1040 }
 0x582   : > { %1044 = vst.msk [vmem:[#allocation5] sm:$0xf] %vm1043_vm6, %v1041_v28 }
 0x589   : > { %v1172_v29 = vpop.permute.xlu0 %1171 }
 0x58a   : > { %1175 = vst.msk [vmem:[#allocation5] sm:$0xf] %vm1174_vm7, %v1172_v29 }
 0x591   : > { %v1303_v30 = vpop.permute.xlu1 %1302 }
 0x592   : > { %1306 = vst.msk [vmem:[#allocation5] sm:$0xf] %vm1305_vm8, %v1303_v30 }
 0x599   : > { %v1307_v31 = vld [vmem:[#allocation5] sm:$0xf] }
 0x59a   : > { %1867 = vmatmul.mubr.msk.bf16.vlgmr.msra.gmra.mrb[16].mxu1 %vm566_vm0, %v1307_v31 }
 0x59b   : > { %1894 = vmatprep.mubr.msk.bf16.mxu1 %vm2091_vm1, %v2090_v8  ;;  %1879 = vmatpush3.bf16.msra.mxu1 %v1980_v46 }
 0x59c   : > { %1880 = vmatprep.subr.bf16.mxu1 %v2090_v8 }
 0x59f   : > { %1881 = vmatpush3.bf16.msra.mxu1 %v1981_v57 }
 0x5a0   : > { %1882 = vmatprep.subr.bf16.mxu1 %v2090_v8 }
 0x5a3   : > { %1883 = vmatpush3.bf16.msra.mxu1 %v1982_v58 }
 0x5a4   : > { %1884 = vmatprep.subr.bf16.mxu1 %v2090_v8 }
 0x5a7   : > { %1885 = vmatpush3.bf16.msra.mxu1 %v1983_v59 }
 0x5a8   : > { %1886 = vmatprep.subr.bf16.mxu1 %v2090_v8 }
 0x5ab   : > { %1887 = vmatpush3.bf16.msra.mxu1 %v1984_v60 }
 0x5ac   : > { %1888 = vmatprep.subr.bf16.mxu1 %v2090_v8 }
 0x5af   : > { %1889 = vmatpush3.bf16.msra.mxu1 %v1985_v61 }
 0x5b0   : > { %1890 = vmatprep.subr.bf16.mxu1 %v2090_v8 }
 0x5b3   : > { %1891 = vmatpush3.bf16.msra.mxu1 %v1986_v62 }
 0x5b4   : > { %1892 = vmatprep.subr.bf16.mxu1 %v2090_v8 }
 0x5b7   : > { %1893 = vmatpush3.bf16.msra.mxu1 %v1987_v63 }
 0x66d   : > { %v1369_v33 = vpop.f32.mrb[16].mxu1 }
 0x66e   : > { %v1370_v34 = vadd.f32 %v1724_v32, %v1369_v33  ;;  %v1868_v35 = vpop.f32.mrb[17].mxu1 }
 0x66f   : > { %v1372_v36 = vpop.f32.mrb[18].mxu1 }
 0x670   : > { %v2384_v37 = vadd.f32 %v1370_v34, %v2249_v0  ;;  %v1869_v38 = vpop.f32.mrb[19].mxu1  ;;  %v1979_v0 = vld [vmem:[%s2508_s13 + $0x8] sm:$0xff]  }
 0x671   : > { %1873 = vmatpush3.bf16.msra.mxu0 %v1979_v0 }
 0x672   : > { %v1378_v39 = vsel %vm566_vm0, %v2384_v37, 0.0 }
 0x673   : > { %1379 = vadd.xlane.f32.xlu1 %v1378_v39 }
 0x700   : > { %v1380_v40 = vpop.xlane.xlu1 %1379 }
 0x701   : > { %v1382_v41 = vmul.f32 0.03125, %v1380_v40 }
 0x703   : > { %v1383_v42 = vsub.f32 %v2384_v37, %v1382_v41 }
 0x705   : > { %v1384_v43 = vmul.f32 %v1383_v42, %v1383_v42 }
 0x707   : > { %v1385_v44 = vsel %vm566_vm0, %v1384_v43, 0.0 }
 0x708   : > { %1386 = vadd.xlane.f32.xlu0 %v1385_v44 }
 0x795   : > { %v1387_v47 = vpop.xlane.xlu0 %1386 }
 0x796   : > { %v1388_v48 = vmul.f32 0.03125, %v1387_v47 }
 0x798   : > { %v1389_v49 = vadd.f32 1e-05, %v1388_v48 }
 0x79a   : > { %2006 = vrsqrt.f32 %v1389_v49 }
 0x7a4   : > { %v2007_v50 = vpop.eup %2006 }
 0x7a5   : > { %v1391_v52 = vmul.f32 %v2007_v50, %v1383_v42 }
 0x7a7   : > { %v1398_v54 = vmul.f32 %v1728_v51, %v1391_v52 }
 0x7a9   : > { %v1405_v55 = vadd.f32 %v1729_v53, %v1398_v54 }
 0x7ab   : > { %v1406_v56 = vpack.c.bf16 %v1405_v55, %v1405_v55 }
 0x7ad   : > { %1875 = vmatmul.mubr.msk.bf16.vlgmr.msra.gmra.mrb[28].mxu0 %vm566_vm0, %v1406_v56 }
 0x880   : > { %v1467_v2 = vpop.f32.mrb[28].mxu0 }
 0x881   : > { %v1468_v3 = vadd.f32 %v1730_v1, %v1467_v2  ;;  %v1876_v4 = vpop.f32.mrb[29].mxu0 }
 0x882   : > { %v1470_v5 = vpop.f32.mrb[30].mxu0 }
 0x883   : > { %v1474_v6 = vmul.f32 0.044715, %v1468_v3  ;;  %v1877_v7 = vpop.f32.mrb[31].mxu0  ;;  %v1473_v8 = vmul.f32 0.5, %v1468_v3 }
 0x885   : > { %v1475_v9 = vmul.f32 %v1474_v6, %v1468_v3 }
 0x887   : > { %v1476_v10 = vmul.f32 %v1475_v9, %v1468_v3 }
 0x889   : > { %v1477_v11 = vadd.f32 %v1476_v10, %v1468_v3 }
 0x88b   : > { %v1478_v12 = vmul.f32 0.7978846, %v1477_v11 }
 0x88d   : > { %2008 = vtanh.f32 %v1478_v12 }
 0x897   : > { %v2009_v13 = vpop.eup %2008 }
 0x898   : > { %v1480_v14 = vadd.f32 1.0, %v2009_v13 }
 0x89a   : > { %v1481_v15 = vmul.f32 %v1480_v14, %v1473_v8 }
 0x89c   : > { %v1482_v16 = vpack.c.bf16 %v1481_v15, %v1481_v15 }
 0x89e   : > { %1895 = vmatmul.mubr.bf16.vlgmr.msra.gmra.mrb[20].mxu1 %v1482_v16 }
 0x971   : > { %v1588_v18 = vpop.f32.mrb[20].mxu1 }
 0x972   : > { %v1589_v19 = vadd.f32 %v1734_v17, %v1588_v18  ;;  %v1896_v20 = vpop.f32.mrb[21].mxu1 }
 0x973   : > { %v1591_v21 = vpop.f32.mrb[22].mxu1 }
 0x974   : > { %v1594_v22 = vadd.f32 %v1589_v19, %v2384_v37  ;;  %v1897_v23 = vpop.f32.mrb[23].mxu1 }
 0x976   : > { %1595 = vst.msk [vmem:[%s553_s28] sm:$0xff] %vm566_vm0, %v1594_v22 }
 0x977   : > { %2023 = shalt.err (!%p2020_p5)
}
 0x978   : > { %s2024_s30 = scalar_lea.hbm %s2447_s2, 128  ;;  %s2028_s23 = scalar_lea.hbm %s2512_s17, 256 }
 0x979   : > { %p2025_p6 = scmp.ne.s32.totalorder %s2447_s2, %s2024_s30  ;;  %p2029_p10 = scmp.lt.u32.totalorder %s2447_s2, %s2512_s17 }
 0x97a   : > { %p2030_p11 = scmp.lt.u32.totalorder %s2028_s23, %s2024_s30  ;;  %p2032_p13 = scmp.lt.u32.totalorder %s2024_s30, %s2447_s2 }
 0x97b   : > { %p2026_p7 = pnand %p2025_p6, %p2229_p4 }
 0x97c   : > { %p2031_p12 = por %p2030_p11, %p2029_p10 }
 0x97d   : > { %p2027_p9 = pneg %p2026_p7 }
 0x97e   : > { %p2033_p0 = por %p2032_p13, %p2031_p12 }
 0x980   : > { %p2034_p1 = pnand %p2033_p0, %p2027_p9 }
 0x982   : > { %2037 = shalt.err (!%p2034_p1)
}
 0x983   : > { %1898 = dma.vmem_to_hbm [thread:$0]  (%p2229_p4), %s2449_s18, 128, %s2447_s2, %s1597_s27  }
 0x984 PF: > { %s2531_s4 = sld [smem:[#allocation9_spill]]  ;;  %p1904_p2 = scmp.ge.s32.totalorder %s2088_s29, 2 }
 0x986   : > { %p1901_p3 = pnand %p1904_p2, %p2236_p8 }
 0x98a   : > { %s1623_s3 = sand.u32 1, %s2531_s4  }
 0x98b   : > { %s1624_s20 = scalar_lea.sflag [#allocation7], %s1623_s3 }
 0x98c   : > { %2063 = dma.done.wait (!%p1901_p3), %s1624_s20, 128  }
 0x98d   : > { %2065 = vsyncadd (!%p1901_p3), %s1624_s20, 4294967168  ;;  %s30_s29 = sadd.s32 1, %s2088_s29   ;;  %s2532_s27 = sld [smem:[#allocation10_spill]] }
 0x98e   : > { %p27_p5 = scmp.ge.s32.totalorder %s30_s29, 4   ;;  %s2533_s28 = sld [smem:[#allocation11_spill]] }
 0x98f   : > { %s2534_s24 = smov %s2072_s25  ;;  %s2535_s25 = smov %s2076_s26 }
 0x990   : > { %s2536_s26 = smov %s2242_s22  ;;  %29 = sbr.rel (!%p27_p5) target bundleno = 10 (0xa), region = 129 }
 0x997   :  { %1629 = vsyncpa [#allocation7], 1 }
 0x998   :  { %1631 = vsyncpa [#allocation7 + $0x1], 1 }

// kernel: clip_encoder.2
= control target key start
LH: loop header
LB: loop body
LE: loop exit
PB: predicated region body
PF: predicated region fallthrough
CT: control target
= control target key end

     0   :  { %s2955_s0 = inlined_call_operand.vmem [shape: f32[2,8,32], index: 0, kind: input, shape index: {}]   ;;  %s2956_s1 = inlined_call_operand.vmem [shape: f32[1,32], index: 1, kind: input, shape index: {}]   ;;  %s2957_s2 = inlined_call_operand.vmem [shape: f32[1,32], index: 2, kind: input, shape index: {}]   ;;  %s2958_s3 = inlined_call_operand.vmem [shape: bf16[32,32], index: 3, kind: input, shape index: {}]   ;;  %s2959_s4 = inlined_call_operand.hbm [shape: f32[1,32], index: 4, kind: input, shape index: {}]   ;;  %s2960_s5 = inlined_call_operand.vmem [shape: bf16[32,32], index: 5, kind: input, shape index: {}]   ;;  %s2961_s6 = inlined_call_operand.hbm [shape: f32[1,32], index: 6, kind: input, shape index: {}]   ;;  %s2962_s7 = inlined_call_operand.vmem [shape: bf16[32,32], index: 7, kind: input, shape index: {}]   ;;  %s2963_s8 = inlined_call_operand.hbm [shape: f32[1,32], index: 8, kind: input, shape index: {}]   ;;  %s2964_s9 = inlined_call_operand.vmem [shape: bf16[32,32], index: 9, kind: input, shape index: {}]   ;;  %s2965_s10 = inlined_call_operand.hbm [shape: f32[1,32], index: 10, kind: input, shape index: {}]   ;;  %s2966_s11 = inlined_call_operand.vmem [shape: f32[1,32], index: 11, kind: input, shape index: {}]   ;;  %s2967_s12 = inlined_call_operand.hbm [shape: f32[1,32], index: 12, kind: input, shape index: {}]   ;;  %s2968_s13 = inlined_call_operand.vmem [shape: bf16[32,128], index: 13, kind: input, shape index: {}]   ;;  %s2969_s14 = inlined_call_operand.hbm [shape: f32[1,128], index: 14, kind: input, shape index: {}]   ;;  %s2970_s15 = inlined_call_operand.vmem [shape: bf16[128,32], index: 15, kind: input, shape index: {}]   ;;  %s2971_s16 = inlined_call_operand.hbm [shape: f32[1,32], index: 16, kind: input, shape index: {}]   ;;  %s2972_s17 = inlined_call_operand.vmem [shape: f32[2,8,32], index: 17, kind: output, shape index: {}]  }
   0x1   :  { %2978 = sst [smem:[#allocation22_spill]] %s2955_s0 }
   0x2   :  { %2979 = sst [smem:[#allocation23_spill]] %s2956_s1 }
   0x3   :  { %2980 = sst [smem:[#allocation24_spill]] %s2961_s6 }
   0x4   :  { %2981 = sst [smem:[#allocation25_spill]] %s2965_s10 }
   0x5   :  { %2982 = sst [smem:[#allocation26_spill]] %s2966_s11 }
   0x6   :  { %2983 = sst [smem:[#allocation27_spill]] %s2970_s15 }
   0x7   :  { %2984 = sst [smem:[#allocation28_spill]] %s2972_s17 }
   0x8   :  { %22 = vsyncpa [#allocation7], 0 }
   0x9   :  { %23 = vsyncpa [#allocation9], 0 }
   0xa   :  { %24 = vsyncpa [#allocation12], 0 }
   0xb   :  { %25 = vsyncpa [#allocation15], 0  ;;  %s2555_s24 = smov 0   ;;  %s2557_s25 = smov 0  }
   0xc   :  { %s2559_s26 = smov 0  }
   0xd LB: > { %2985 = sst [smem:[#allocation21_spill]] %s2448_s26  ;;  %s2450_s27 = smov [#allocation8]   ;;  %s2448_s26 = sphi %s2559_s26, %s31_s26   ;;  %s2444_s25 = sphi %s2557_s25, %s3001_s25   ;;  %s2440_s24 = sphi %s2555_s24, %s3000_s24  }
   0xe   : > { %s474_s28 = sshll.u32 %s2450_s27, 4  ;;  %s1835_s29 = sadd.s32 4294967295, %s2448_s26   ;;  %s475_s28 = int_to_ptr.vmem [resolvable:$true] %s474_s28 }
   0xf   : > { %p1837_p0 = scmp.ge.s32.totalorder %s2448_s26, 1  ;;  %p438_p1 = scmp.lt.s32.totalorder %s2448_s26, 3 }
  0x10   : > { %p2573_p2 = scmp.eq.s32.totalorder %s1835_s29, 0  ;;  %s2451_s18 = smov [#allocation11]  }
  0x11   : > { %p2577_p3 = pnand %p1837_p0, %p438_p1  ;;  %s502_s19 = sshll.u32 %s2451_s18, 4  ;;  %s2583_s19 = int_to_ptr.vmem [resolvable:$true] %s502_s19 }
  0x12   : > { %s2986_s0 = scalar_select %p2573_p2, 1, 0 }
  0x13   : > { %s2987_s30 = scalar_select %p2577_p3, 1, 0 }
  0x14   : > { %p2090_p4 = pneg %p2577_p3  ;;  %s2452_s1 = smov [#allocation14]  }
  0x15   : > { %s530_s20 = sshll.u32 %s2452_s1, 4  ;;  %s2989_s6 = sld [smem:[#allocation24_spill]]  ;;  %s2591_s20 = int_to_ptr.vmem [resolvable:$true] %s530_s20 }
  0x16   : > { %p2587_p5 = pnand %p2573_p2, %p2090_p4 }
  0x18   : > { %p2601_p7 = pneg %p2587_p5 }
  0x1b   : > { %s2214_s27 = scalar_lea.hbm %s2989_s6, 16 }
  0x1c   : > { %p2215_p6 = scmp.ne.s32.totalorder %s2989_s6, %s2214_s27  ;;  %p2221_p10 = scmp.lt.u32.totalorder %s2214_s27, %s2989_s6 }
  0x1e   : > { %p2217_p8 = pnand %p2601_p7, %p2215_p6 }
  0x20   : > { %p2218_p9 = pneg %p2217_p8 }
  0x22   : > { %p2223_p11 = pnand %p2221_p10, %p2218_p9 }
  0x24   : > { %2226 = shalt.err (!%p2223_p11)
}
  0x25   : > { %s2227_s22 = scalar_lea.vmem %s475_s28, 16  ;;  %s2234_s23 = scalar_lea.vmem %s475_s28, 32 }
  0x26   : > { %p2228_p12 = scmp.ne.s32.totalorder %s475_s28, %s2227_s22  ;;  %p2235_p1 = scmp.lt.s32.totalorder %s475_s28, %s475_s28 }
  0x27   : > { %p2236_p4 = scmp.lt.s32.totalorder %s2234_s23, %s2227_s22 }
  0x28   : > { %p2230_p13 = pnand %p2228_p12, %p2601_p7 }
  0x29   : > { %p2237_p2 = por %p2236_p4, %p2235_p1 }
  0x2a   : > { %p2231_p0 = pneg %p2230_p13 }
  0x2c   : > { %p2238_p3 = pnand %p2237_p2, %p2231_p0 }
  0x2e   : > { %2241 = shalt.err (!%p2238_p3)
}
  0x2f   : > { %2096 = dma.hbm_to_vmem [thread:$0]  (!%p2587_p5), %s2989_s6, 16, %s475_s28, [#allocation9]  }
  0x30   : > { %s2991_s10 = sld [smem:[#allocation25_spill]] }
  0x36   : > { %s2242_s1 = scalar_lea.hbm %s2991_s10, 16 }
  0x37   : > { %p2243_p6 = scmp.ne.s32.totalorder %s2991_s10, %s2242_s1  ;;  %p2249_p2 = scmp.lt.u32.totalorder %s2242_s1, %s2991_s10 }
  0x39   : > { %p2245_p8 = pnand %p2243_p6, %p2601_p7 }
  0x3b   : > { %p2246_p9 = pneg %p2245_p8 }
  0x3d   : > { %p2251_p3 = pnand %p2249_p2, %p2246_p9 }
  0x3f   : > { %2254 = shalt.err (!%p2251_p3)
}
  0x40   : > { %s2255_s28 = scalar_lea.vmem %s2583_s19, 16  ;;  %s2262_s11 = scalar_lea.vmem %s2583_s19, 32 }
  0x41   : > { %p2256_p10 = scmp.ne.s32.totalorder %s2583_s19, %s2255_s28  ;;  %p2263_p13 = scmp.lt.s32.totalorder %s2583_s19, %s2583_s19 }
  0x42   : > { %p2264_p0 = scmp.lt.s32.totalorder %s2262_s11, %s2255_s28 }
  0x43   : > { %p2258_p11 = pnand %p2256_p10, %p2601_p7 }
  0x44   : > { %p2265_p1 = por %p2264_p0, %p2263_p13 }
  0x45   : > { %p2259_p12 = pneg %p2258_p11 }
  0x47   : > { %p2266_p4 = pnand %p2265_p1, %p2259_p12 }
  0x49   : > { %2269 = shalt.err (!%p2266_p4)
}
  0x4a   : > { %2102 = dma.hbm_to_vmem [thread:$0]  (!%p2587_p5), %s2991_s10, 16, %s2583_s19, [#allocation12]  }
  0x4b   : > { %s2270_s27 = scalar_lea.hbm %s2969_s14, 16 }
  0x4c   : > { %p2271_p6 = scmp.ne.s32.totalorder %s2969_s14, %s2270_s27  ;;  %p2277_p2 = scmp.lt.u32.totalorder %s2270_s27, %s2969_s14 }
  0x4e   : > { %p2273_p8 = pnand %p2271_p6, %p2601_p7 }
  0x50   : > { %p2274_p9 = pneg %p2273_p8 }
  0x52   : > { %p2279_p3 = pnand %p2277_p2, %p2274_p9 }
  0x54   : > { %2282 = shalt.err (!%p2279_p3)
}
  0x55   : > { %s2283_s19 = scalar_lea.vmem %s2591_s20, 16  ;;  %s2290_s11 = scalar_lea.vmem %s2591_s20, 32 }
  0x56   : > { %p2284_p10 = scmp.ne.s32.totalorder %s2591_s20, %s2283_s19  ;;  %p2291_p13 = scmp.lt.s32.totalorder %s2591_s20, %s2591_s20 }
  0x57   : > { %p2292_p0 = scmp.lt.s32.totalorder %s2290_s11, %s2283_s19 }
  0x58   : > { %p2286_p11 = pnand %p2284_p10, %p2601_p7 }
  0x59   : > { %p2293_p1 = por %p2292_p0, %p2291_p13 }
  0x5a   : > { %p2287_p12 = pneg %p2286_p11 }
  0x5c   : > { %p2294_p4 = pnand %p2293_p1, %p2287_p12 }
  0x5e   : > { %2297 = shalt.err (!%p2294_p4)
}
  0x5f   : > { %2108 = dma.hbm_to_vmem [thread:$0]  (!%p2587_p5), %s2969_s14, 16, %s2591_s20, [#allocation15]  }
  0x60   : > { %s43_s18 = sadd.s32 1, %s2444_s25  ;;  %s2453_s17 = smov [#allocation6]  }
  0x61   : > { %p45_p6 = scmp.ge.s32.totalorder %s43_s18, 2  ;;  %s460_s27 = sshll.u32 %s2453_s17, 4  ;;  %s461_s27 = int_to_ptr.vmem [resolvable:$true] %s460_s27 }
  0x62   : > { %s2298_s23 = scalar_lea.hbm %s2959_s4, 16 }
  0x63   : > { %s3003_s18 = smov (%p45_p6, %s43_s18), 0  ;;  %p2299_p8 = scmp.ne.s32.totalorder %s2959_s4, %s2298_s23 }
  0x64   : > { %p2305_p3 = scmp.lt.u32.totalorder %s2298_s23, %s2959_s4 }
  0x65   : > { %p2301_p9 = pnand %p2299_p8, %p2601_p7 }
  0x67   : > { %p2302_p2 = pneg %p2301_p9 }
  0x69   : > { %p2307_p10 = pnand %p2305_p3, %p2302_p2 }
  0x6b   : > { %2310 = shalt.err (!%p2307_p10)
}
  0x6c   : > { %s2311_s15 = scalar_lea.vmem %s461_s27, 16  ;;  %s2318_s29 = scalar_lea.vmem %s461_s27, 32 }
  0x6d   : > { %p2312_p11 = scmp.ne.s32.totalorder %s461_s27, %s2311_s15  ;;  %p2319_p0 = scmp.lt.s32.totalorder %s461_s27, %s461_s27 }
  0x6e   : > { %p2320_p1 = scmp.lt.s32.totalorder %s2318_s29, %s2311_s15 }
  0x6f   : > { %p2314_p12 = pnand %p2312_p11, %p2601_p7 }
  0x70   : > { %p2321_p4 = por %p2320_p1, %p2319_p0 }
  0x71   : > { %p2315_p13 = pneg %p2314_p12 }
  0x73   : > { %p2322_p6 = pnand %p2321_p4, %p2315_p13 }
  0x75   : > { %2325 = shalt.err (!%p2322_p6)
}
  0x76   : > { %2093 = dma.hbm_to_vmem [thread:$0]  (!%p2587_p5), %s2959_s4, 16, %s461_s27, [#allocation7]  }
  0x77   : > { %s2454_s22 = smov [#allocation10]   ;;  %s2455_s28 = smov [#allocation13]  }
  0x78   : > { %s488_s23 = sshll.u32 %s2454_s22, 4  ;;  %s516_s19 = sshll.u32 %s2455_s28, 4  ;;  %s489_s23 = int_to_ptr.vmem [resolvable:$true] %s488_s23  ;;  %s517_s19 = int_to_ptr.vmem [resolvable:$true] %s516_s19 }
  0x79   : > { %s2326_s6 = scalar_lea.hbm %s2963_s8, 16 }
  0x7a   : > { %p2327_p8 = scmp.ne.s32.totalorder %s2963_s8, %s2326_s6  ;;  %p2333_p3 = scmp.lt.u32.totalorder %s2326_s6, %s2963_s8 }
  0x7c   : > { %p2329_p9 = pnand %p2327_p8, %p2601_p7 }
  0x7e   : > { %p2330_p2 = pneg %p2329_p9 }
  0x80   : > { %p2335_p10 = pnand %p2333_p3, %p2330_p2 }
  0x82   : > { %2338 = shalt.err (!%p2335_p10)
}
  0x83   : > { %s2339_s27 = scalar_lea.vmem %s489_s23, 16  ;;  %s2346_s1 = scalar_lea.vmem %s489_s23, 32 }
  0x84   : > { %p2340_p11 = scmp.ne.s32.totalorder %s489_s23, %s2339_s27  ;;  %p2347_p0 = scmp.lt.s32.totalorder %s489_s23, %s489_s23 }
  0x85   : > { %p2348_p1 = scmp.lt.s32.totalorder %s2346_s1, %s2339_s27 }
  0x86   : > { %p2342_p12 = pnand %p2340_p11, %p2601_p7 }
  0x87   : > { %p2349_p4 = por %p2348_p1, %p2347_p0 }
  0x88   : > { %p2343_p13 = pneg %p2342_p12 }
  0x8a   : > { %p2350_p6 = pnand %p2349_p4, %p2343_p13 }
  0x8c   : > { %2353 = shalt.err (!%p2350_p6)
}
  0x8d   : > { %2099 = dma.hbm_to_vmem [thread:$0]  (!%p2587_p5), %s2963_s8, 16, %s489_s23, [#allocation9]  }
  0x8e   : > { %s2354_s11 = scalar_lea.hbm %s2967_s12, 16 }
  0x8f   : > { %p2355_p8 = scmp.ne.s32.totalorder %s2967_s12, %s2354_s11  ;;  %p2361_p3 = scmp.lt.u32.totalorder %s2354_s11, %s2967_s12 }
  0x91   : > { %p2357_p9 = pnand %p2355_p8, %p2601_p7 }
  0x93   : > { %p2358_p2 = pneg %p2357_p9 }
  0x95   : > { %p2363_p10 = pnand %p2361_p3, %p2358_p2 }
  0x97   : > { %2366 = shalt.err (!%p2363_p10)
}
  0x98   : > { %s2367_s27 = scalar_lea.vmem %s517_s19, 16  ;;  %s2374_s23 = scalar_lea.vmem %s517_s19, 32 }
  0x99   : > { %p2368_p11 = scmp.ne.s32.totalorder %s517_s19, %s2367_s27  ;;  %p2375_p0 = scmp.lt.s32.totalorder %s517_s19, %s517_s19 }
  0x9a   : > { %p2376_p1 = scmp.lt.s32.totalorder %s2374_s23, %s2367_s27 }
  0x9b   : > { %p2370_p12 = pnand %p2368_p11, %p2601_p7 }
  0x9c   : > { %p2377_p4 = por %p2376_p1, %p2375_p0 }
  0x9d   : > { %p2371_p13 = pneg %p2370_p12 }
  0x9f   : > { %p2378_p6 = pnand %p2377_p4, %p2371_p13 }
  0xa1   : > { %2381 = shalt.err (!%p2378_p6)
}
  0xa2   : > { %2105 = dma.hbm_to_vmem [thread:$0]  (!%p2587_p5), %s2967_s12, 16, %s517_s19, [#allocation12]  }
  0xa3   : > { %s2456_s28 = smov [#allocation16]   ;;  %s2382_s20 = scalar_lea.hbm %s2971_s16, 16 }
  0xa4   : > { %s544_s6 = sshll.u32 %s2456_s28, 4  ;;  %p2383_p8 = scmp.ne.s32.totalorder %s2971_s16, %s2382_s20  ;;  %s545_s6 = int_to_ptr.vmem [resolvable:$true] %s544_s6 }
  0xa5   : > { %p2389_p3 = scmp.lt.u32.totalorder %s2382_s20, %s2971_s16 }
  0xa6   : > { %p2385_p9 = pnand %p2383_p8, %p2601_p7 }
  0xa8   : > { %p2386_p2 = pneg %p2385_p9 }
  0xaa   : > { %p2391_p10 = pnand %p2389_p3, %p2386_p2 }
  0xac   : > { %2394 = shalt.err (!%p2391_p10)
}
  0xad   : > { %s2395_s19 = scalar_lea.vmem %s545_s6, 16  ;;  %s2402_s23 = scalar_lea.vmem %s545_s6, 32 }
  0xae   : > { %p2396_p11 = scmp.ne.s32.totalorder %s545_s6, %s2395_s19  ;;  %p2403_p0 = scmp.lt.s32.totalorder %s545_s6, %s545_s6 }
  0xaf   : > { %p2404_p1 = scmp.lt.s32.totalorder %s2402_s23, %s2395_s19 }
  0xb0   : > { %p2398_p12 = pnand %p2396_p11, %p2601_p7 }
  0xb1   : > { %p2405_p4 = por %p2404_p1, %p2403_p0 }
  0xb2   : > { %p2399_p13 = pneg %p2398_p12 }
  0xb4   : > { %p2406_p6 = pnand %p2405_p4, %p2399_p13 }
  0xb6   : > { %2409 = shalt.err (!%p2406_p6)
}
  0xb7   : > { %2111 = dma.hbm_to_vmem [thread:$0]  (!%p2587_p5), %s2971_s16, 16, %s545_s6, [#allocation15]  }
  0xb8   : > { %p2992_p8 = scmp.ne.s32.totalorder %s2987_s30, 0 }
  0xb9   : > { %p2993_p9 = scmp.ne.s32.totalorder (!%p2992_p8), %s2986_s0, 0 }
  0xba   : > { %564 = sbr.rel (%p2992_p8) target bundleno = 2596 (0xa24), region = 88 }
  0xc1   : > { %2423 = dma.done.wait (%p2993_p9), [#allocation7], 16  }
  0xc2   : > { %2425 = vsyncadd (%p2993_p9), [#allocation7], 4294967280 }
  0xc3   : > { %2427 = dma.done.wait (%p2993_p9), [#allocation9], 32  }
  0xc4   : > { %2429 = vsyncadd (%p2993_p9), [#allocation9], 4294967264 }
  0xc5   : > { %2431 = dma.done.wait (%p2993_p9), [#allocation12], 32  }
  0xc6   : > { %2433 = vsyncadd (%p2993_p9), [#allocation12], 4294967264 }
  0xc7   : > { %2435 = dma.done.wait (%p2993_p9), [#allocation15], 32  }
  0xc8   : > { %2437 = vsyncadd (%p2993_p9), [#allocation15], 4294967264  ;;  %p641_p5 = scmp.lt.s32.totalorder %s2440_s24, 1  ;;  %s2994_s28 = sld [smem:[#allocation22_spill]]  ;;  %vm660_vm0 = vcmask 261120   ;;  %v2165_v7 = vld [vmem:[%s2958_s3] sm:$0xff]  }
  0xc9   : > { %v2457_v8 = vmov 0.0   ;;  %vm2458_vm1 = vmmov 0   ;;  %v2166_v9 = vld [vmem:[%s2958_s3 + $0x8] sm:$0xff]   ;;  %s2995_s17 = sld [smem:[#allocation23_spill]]  ;;  %v1857_v16 = vld [vmem:[%s2957_s2] ss:$0 sm:$0xff] }
  0xca   : > { %s3005_s24 = smov (!%p641_p5, %s2440_s24), 1  ;;  %1954 = vmatprep.subr.bf16.mxu0 %v2457_v8  ;;  %1958 = vmatprep.mubr.msk.bf16.mxu0 %vm2458_vm1, %v2457_v8  ;;  %v2167_v19 = vld [vmem:[%s2960_s5] sm:$0xff]   ;;  %v2168_v21 = vld [vmem:[%s2960_s5 + $0x8] sm:$0xff]   ;;  %v1858_v24 = vld [vmem:[#allocation6] ss:$0 sm:$0xff]  ;;  %vm757_vm2 = vcmask 257024  }
  0xcb   : > { %s1854_s26 = sshll.u32 %s3005_s24, 3  ;;  %1955 = vmatpush3.bf16.msra.mxu0 %v2165_v7  ;;  %1978 = vmatprep.subr.bf16.mxu1 %v2457_v8  ;;  %v2169_v22 = vld [vmem:[%s2962_s7] sm:$0xff]   ;;  %v2170_v23 = vld [vmem:[%s2962_s7 + $0x8] sm:$0xff]   ;;  %v1862_v31 = vld [vmem:[#allocation8] ss:$0 sm:$0xff]  ;;  %vm899_vm3 = vcmask 64512  }
  0xcc   : > { %1956 = vmatprep.subr.bf16.mxu0 %v2457_v8  ;;  %1980 = vmatprep.mubr.msk.bf16.mxu1 %vm2458_vm1, %v2457_v8  ;;  %v1866_v38 = vld [vmem:[#allocation10] ss:$0 sm:$0xff]  ;;  %s2459_s10 = smov 112   ;;  %s2460_s11 = smov 120   ;;  %vm959_vm4 = vcmask 1043456   ;;  %vm1006_vm5 = vcmask 60416  }
  0xcd   : > { %s2461_s20 = smov 104   ;;  %s2462_s15 = smov 8   ;;  %vm1137_vm6 = vcmask 126016   ;;  %vm1268_vm7 = vcmask 191616   ;;  %vm1399_vm8 = vcmask 257216  }
  0xce   : > { %s644_s6 = scalar_lea.vmem %s2994_s28, %s1854_s26  ;;  %s2463_s23 = smov 16  }
  0xcf   : > { %v2768_v0 = vld [vmem:[%s644_s6] sm:$0xff]  ;;  %1957 = vmatpush3.bf16.msra.mxu0 %v2166_v9  ;;  %s2464_s1 = smov 24  }
  0xd0   : > { %v661_v1 = vsel %vm660_vm0, %v2768_v0, 0.0  ;;  %1962 = vmatprep.subr.bf16.mxu0 %v2457_v8  ;;  %v1856_v14 = vld [vmem:[%s2995_s17] ss:$0 sm:$0xff]  ;;  %s2998_s17 = sld [smem:[#allocation28_spill]] }
  0xd1   : > { %662 = vadd.xlane.f32.xlu0 %v661_v1 }
  0xd6   : > { %s651_s27 = scalar_lea.vmem %s2998_s17, %s1854_s26 }
 0x15e   : > { %v663_v2 = vpop.xlane.xlu0 %662 }
 0x15f   : > { %v665_v3 = vmul.f32 0.03125, %v663_v2 }
 0x161   : > { %v666_v4 = vsub.f32 %v2768_v0, %v665_v3 }
 0x163   : > { %v667_v5 = vmul.f32 %v666_v4, %v666_v4 }
 0x165   : > { %v668_v6 = vsel %vm660_vm0, %v667_v5, 0.0 }
 0x166   : > { %669 = vadd.xlane.f32.xlu0 %v668_v6 }
 0x1f3   : > { %v670_v10 = vpop.xlane.xlu0 %669 }
 0x1f4   : > { %v671_v11 = vmul.f32 0.03125, %v670_v10 }
 0x1f6   : > { %v672_v12 = vadd.f32 1e-05, %v671_v11 }
 0x1f8   : > { %2192 = vrsqrt.f32 %v672_v12 }
 0x202   : > { %v2193_v13 = vpop.eup %2192 }
 0x203   : > { %v674_v15 = vmul.f32 %v2193_v13, %v666_v4 }
 0x205   : > { %v681_v17 = vmul.f32 %v1856_v14, %v674_v15 }
 0x207   : > { %v688_v18 = vadd.f32 %v1857_v16, %v681_v17 }
 0x209   : > { %v689_v20 = vpack.c.bf16 %v688_v18, %v688_v18 }
 0x20b   : > { %1959 = vmatmul.mubr.msk.bf16.vlgmr.msra.gmra.mrb[0].mxu0 %vm660_vm0, %v689_v20 }
 0x20c   : > { %1963 = vmatpush3.bf16.msra.mxu0 %v2167_v19  ;;  %1966 = vmatprep.mubr.msk.bf16.mxu0 %vm2458_vm1, %v2457_v8 }
 0x20d   : > { %1964 = vmatprep.subr.bf16.mxu0 %v2457_v8 }
 0x210   : > { %1965 = vmatpush3.bf16.msra.mxu0 %v2168_v21 }
 0x211   : > { %1970 = vmatprep.subr.bf16.mxu0 %v2457_v8 }
 0x213   : > { %1967 = vmatmul.mubr.msk.bf16.vlgmr.msra.gmra.mrb[4].mxu0 %vm660_vm0, %v689_v20 }
 0x214   : > { %1971 = vmatpush3.bf16.msra.mxu0 %v2169_v22  ;;  %1974 = vmatprep.mubr.msk.bf16.mxu0 %vm2458_vm1, %v2457_v8 }
 0x215   : > { %1972 = vmatprep.subr.bf16.mxu0 %v2457_v8 }
 0x218   : > { %1973 = vmatpush3.bf16.msra.mxu0 %v2170_v23 }
 0x219   : > { %1984 = vmatprep.subr.bf16.mxu0 %v2457_v8 }
 0x21b   : > { %1975 = vmatmul.mubr.msk.bf16.vlgmr.msra.gmra.mrb[8].mxu0 %vm660_vm0, %v689_v20 }
 0x21c   : > { %1986 = vmatprep.mubr.msk.bf16.mxu0 %vm2458_vm1, %v2457_v8 }
 0x2de   : > { %v750_v25 = vpop.f32.mrb[0].mxu0 }
 0x2df   : > { %v751_v26 = vadd.f32 %v1858_v24, %v750_v25  ;;  %v1960_v27 = vpop.f32.mrb[1].mxu0 }
 0x2e0   : > { %v753_v28 = vpop.f32.mrb[2].mxu0 }
 0x2e1   : > { %v756_v29 = vpack.c.bf16 %v751_v26, %v751_v26  ;;  %v1961_v30 = vpop.f32.mrb[3].mxu0 }
 0x2e3   : > { %758 = vst.msk [vmem:[#allocation2] sm:$0xf] %vm757_vm2, %v756_v29 }
 0x2e6   : > { %v816_v32 = vpop.f32.mrb[4].mxu0 }
 0x2e7   : > { %v817_v33 = vadd.f32 %v1862_v31, %v816_v32  ;;  %v1968_v34 = vpop.f32.mrb[5].mxu0 }
 0x2e8   : > { %v819_v35 = vpop.f32.mrb[6].mxu0 }
 0x2e9   : > { %v822_v36 = vpack.c.bf16 %v817_v33, %v817_v33  ;;  %v1969_v37 = vpop.f32.mrb[7].mxu0 }
 0x2ea   : > { %v2173_v49 = vld [vmem:[#allocation2] ss:$0 sps:$4 sm:$0xff]  }
 0x2eb   : > { %823 = vst.msk [vmem:[#allocation3] sm:$0xf] %vm757_vm2, %v822_v36  ;;  %v896_v50 = vld [vmem:[#allocation2] sm:$0xf] }
 0x2ec   : > { %v2174_v53 = vld [vmem:[#allocation2] ss:$0 sps:$4 sm:$0xff]  }
 0x2ed   : > { %v2176_v55 = vld [vmem:[#allocation2] ss:$0 sps:$4 sm:$0xff]  }
 0x2ee   : > { %v881_v39 = vpop.f32.mrb[8].mxu0 }
 0x2ef   : > { %v882_v40 = vadd.f32 %v1866_v38, %v881_v39  ;;  %v1976_v41 = vpop.f32.mrb[9].mxu0 }
 0x2f0   : > { %v884_v42 = vpop.f32.mrb[10].mxu0 }
 0x2f1   : > { %v887_v43 = vpack.c.bf16 %v882_v40, %v882_v40  ;;  %v1977_v44 = vpop.f32.mrb[11].mxu0 }
 0x2f2   : > { %v897_v45 = vld [vmem:[#allocation3] sm:$0xf] }
 0x2f3   : > { %v2171_v46 = vld [vmem:[#allocation3] ss:$0 sps:$4 sm:$0xff]   ;;  %888 = vst.msk [vmem:[#allocation4] sm:$0xf] %vm757_vm2, %v887_v43  ;;  %v904_v47 = vsel %vm899_vm3, %v897_v45, 0 }
 0x2f4   : > { %v2172_v48 = vld [vmem:[#allocation3] ss:$0 sps:$4 sm:$0xff]   ;;  %1979 = vmatpush3.bf16.xpose.msra.mxu1 %v904_v47  ;;  %1150 = vrot.lane.b32.xlu0 %v2171_v46, %s2459_s10 }
 0x2f5   : > { %1019 = vrot.lane.b32.xlu1 %v2172_v48, %s2460_s11  ;;  %1990 = vmatprep.subr.bf16.mxu1 %v2457_v8  ;;  %v2175_v54 = vld [vmem:[#allocation3] ss:$0 sps:$4 sm:$0xff]  }
 0x2f9   : > { %1014 = vrot.lane.b32.xlu1 %v2173_v49, %s2460_s11 }
 0x2fa   : > { %v898_v51 = vld [vmem:[#allocation4] sm:$0xf] }
 0x2fb   : > { %1981 = vmatmul.mubr.msk.bf16.vlgmr.msra.gmra.mrb[0].mxu1 %vm899_vm3, %v896_v50  ;;  %v961_v52 = vsel %vm959_vm4, %v898_v51, 0  ;;  %v2177_v7 = vld [vmem:[#allocation4] ss:$0 sps:$4 sm:$0xff]  }
 0x2fc   : > { %1985 = vmatpush3.bf16.msra.mxu0 %v961_v52  ;;  %1992 = vmatprep.mubr.msk.bf16.mxu1 %vm2458_vm1, %v2457_v8  ;;  %v2178_v24 = vld [vmem:[#allocation4] ss:$0 sps:$4 sm:$0xff]  }
 0x2fd   : > { %1145 = vrot.lane.b32.xlu1 %v2174_v53, %s2459_s10  ;;  %1996 = vmatprep.subr.bf16.mxu0 %v2457_v8  ;;  %v2179_v28 = vld [vmem:[#allocation4] ss:$0 sps:$4 sm:$0xff]  }
 0x301   : > { %1281 = vrot.lane.b32.xlu1 %v2175_v54, %s2461_s20 }
 0x305   : > { %1276 = vrot.lane.b32.xlu1 %v2176_v55, %s2461_s20 }
 0x366   : > { %v1151_v59 = vpop.permute.xlu0 %1150 }
 0x367   : > { %v1020_v56 = vpop.permute.xlu1 %1019  ;;  %v1156_v61 = vsel %vm899_vm3, %v1151_v59, 0 }
 0x368   : > { %v1025_v57 = vsel %vm899_vm3, %v1020_v56, 0 }
 0x369   : > { %1991 = vmatpush3.bf16.xpose.msra.mxu1 %v1025_v57 }
 0x36a   : > { %2002 = vmatprep.subr.bf16.mxu1 %v2457_v8 }
 0x36b   : > { %v1015_v58 = vpop.permute.xlu1 %1014 }
 0x36f   : > { %v1146_v60 = vpop.permute.xlu1 %1145 }
 0x370   : > { %1993 = vmatmul.mubr.msk.bf16.vlgmr.msra.gmra.mrb[4].mxu1 %vm899_vm3, %v1015_v58 }
 0x371   : > { %2003 = vmatpush3.bf16.xpose.msra.mxu1 %v1156_v61  ;;  %2004 = vmatprep.mubr.msk.bf16.mxu1 %vm2458_vm1, %v2457_v8 }
 0x372   : > { %2014 = vmatprep.subr.bf16.mxu1 %v2457_v8 }
 0x373   : > { %v1282_v62 = vpop.permute.xlu1 %1281 }
 0x374   : > { %v1287_v63 = vsel %vm899_vm3, %v1282_v62, 0 }
 0x377   : > { %v1277_v1 = vpop.permute.xlu1 %1276 }
 0x378   : > { %2005 = vmatmul.mubr.msk.bf16.vlgmr.msra.gmra.mrb[8].mxu1 %vm899_vm3, %v1146_v60 }
 0x379   : > { %2015 = vmatpush3.bf16.xpose.msra.mxu1 %v1287_v63  ;;  %2016 = vmatprep.mubr.msk.bf16.mxu1 %vm2458_vm1, %v2457_v8 }
 0x37a   : > { %2026 = vmatprep.subr.bf16.mxu1 %v2457_v8 }
 0x380   : > { %2017 = vmatmul.mubr.msk.bf16.vlgmr.msra.gmra.mrb[12].mxu1 %vm899_vm3, %v1277_v1 }
 0x381   : > { %2030 = vmatprep.mubr.msk.bf16.mxu1 %vm2458_vm1, %v2457_v8 }
 0x3ce   : > { %v940_v2 = vpop.f32.mrb[0].mxu1 }
 0x3cf   : > { %v1982_v3 = vpop.f32.mrb[1].mxu1  ;;  %v946_v4 = vsel %vm899_vm3, %v940_v2, -inf }
 0x3d0   : > { %947 = vmax.xlane.f32.xlu1 %v946_v4  ;;  %v943_v5 = vpop.f32.mrb[2].mxu1 }
 0x3d1   : > { %v1983_v6 = vpop.f32.mrb[3].mxu1 }
 0x3e1   : > { %1211 = vrot.lane.b32.xlu1 %v2177_v7, %s2459_s10  ;;  %s2996_s10 = sld [smem:[#allocation27_spill]] }
 0x443   : > { %v1061_v9 = vpop.f32.mrb[4].mxu1 }
 0x444   : > { %v1994_v10 = vpop.f32.mrb[5].mxu1  ;;  %v1067_v11 = vsel %vm899_vm3, %v1061_v9, -inf }
 0x445   : > { %1068 = vmax.xlane.f32.xlu0 %v1067_v11  ;;  %v1064_v12 = vpop.f32.mrb[6].mxu1 }
 0x446   : > { %v1995_v13 = vpop.f32.mrb[7].mxu1 }
 0x44b   : > { %v1192_v14 = vpop.f32.mrb[8].mxu1 }
 0x44c   : > { %v2006_v15 = vpop.f32.mrb[9].mxu1  ;;  %v1198_v16 = vsel %vm899_vm3, %v1192_v14, -inf }
 0x44d   : > { %v1195_v17 = vpop.f32.mrb[10].mxu1  ;;  %1199 = vmax.xlane.f32.xlu1 %v1198_v16 }
 0x44e   : > { %v2007_v18 = vpop.f32.mrb[11].mxu1 }
 0x44f   : > { %v2181_v18 = vld [vmem:[%s2964_s9 + $0x8] sm:$0xff]  }
 0x453   : > { %v1323_v19 = vpop.f32.mrb[12].mxu1 }
 0x454   : > { %v2018_v20 = vpop.f32.mrb[13].mxu1  ;;  %v1329_v21 = vsel %vm899_vm3, %v1323_v19, -inf }
 0x455   : > { %v1326_v22 = vpop.f32.mrb[14].mxu1  ;;  %1330 = vmax.xlane.f32.xlu1 %v1329_v21 }
 0x456   : > { %v2019_v23 = vpop.f32.mrb[15].mxu1 }
 0x45b   : > { %1080 = vrot.lane.b32.xlu0 %v2178_v24, %s2460_s11 }
 0x45d   : > { %v948_v25 = vpop.xlane.xlu1 %947 }
 0x45e   : > { %v949_v26 = vsub.f32 %v940_v2, %v948_v25 }
 0x460   : > { %v950_v27 = vmul.f32 1.442695, %v949_v26 }
 0x461   : > { %v1212_v34 = vpop.permute.xlu1 %1211 }
 0x462   : > { %2194 = vpow2.f32 %v950_v27  ;;  %v1217_v45 = vsel %vm959_vm4, %v1212_v34, 0 }
 0x466   : > { %1342 = vrot.lane.b32.xlu1 %v2179_v28, %s2461_s20 }
 0x46c   : > { %v2195_v29 = vpop.eup %2194 }
 0x46d   : > { %v955_v30 = vpack.c.bf16 %v2195_v29, %v2195_v29  ;;  %v952_v55 = vsel %vm899_vm3, %v2195_v29, 0.0 }
 0x46f   : > { %1987 = vmatmul.mubr.msk.bf16.vlgmr.msra.gmra.mrb[12].mxu0 %vm899_vm3, %v955_v30 }
 0x470   : > { %1998 = vmatprep.mubr.msk.bf16.mxu0 %vm2458_vm1, %v2457_v8 }
 0x4d2   : > { %v1069_v31 = vpop.xlane.xlu0 %1068 }
 0x4d3   : > { %v1070_v32 = vsub.f32 %v1061_v9, %v1069_v31 }
 0x4d5   : > { %v1071_v33 = vmul.f32 1.442695, %v1070_v32  ;;  %v1890_v32 = vld [vmem:[#allocation11] ss:$0 sm:$0xff] }
 0x4d6   : > { %v1081_v35 = vpop.permute.xlu0 %1080 }
 0x4d7   : > { %2196 = vpow2.f32 %v1071_v33  ;;  %v1086_v36 = vsel %vm959_vm4, %v1081_v35, 0 }
 0x4d8   : > { %1997 = vmatpush3.bf16.msra.mxu0 %v1086_v36 }
 0x4d9   : > { %2008 = vmatprep.subr.bf16.mxu0 %v2457_v8 }
 0x4da   : > { %v1200_v37 = vpop.xlane.xlu1 %1199 }
 0x4db   : > { %v1201_v38 = vsub.f32 %v1192_v14, %v1200_v37  ;;  %v2180_v14 = vld [vmem:[%s2964_s9] sm:$0xff]  }
 0x4dc   : > { %2027 = vmatpush3.bf16.msra.mxu1 %v2180_v14 }
 0x4dd   : > { %v1202_v39 = vmul.f32 1.442695, %v1201_v38  ;;  %2028 = vmatprep.subr.bf16.mxu1 %v2457_v8 }
 0x4df   : > { %2198 = vpow2.f32 %v1202_v39 }
 0x4e0   : > { %2029 = vmatpush3.bf16.msra.mxu1 %v2181_v18 }
 0x4e1   : > { %v2197_v40 = vpop.eup %2196  ;;  %2042 = vmatprep.subr.bf16.mxu1 %v2457_v8 }
 0x4e2   : > { %v1331_v41 = vpop.xlane.xlu1 %1330  ;;  %v1073_v42 = vsel %vm899_vm3, %v2197_v40, 0.0  ;;  %v1076_v43 = vpack.c.bf16 %v2197_v40, %v2197_v40 }
 0x4e3   : > { %v1332_v44 = vsub.f32 %v1323_v19, %v1331_v41  ;;  %1074 = vadd.xlane.f32.xlu0 %v1073_v42 }
 0x4e4   : > { %1999 = vmatmul.mubr.msk.bf16.vlgmr.msra.gmra.mrb[16].mxu0 %vm899_vm3, %v1076_v43 }
 0x4e5   : > { %v1333_v46 = vmul.f32 1.442695, %v1332_v44  ;;  %2009 = vmatpush3.bf16.msra.mxu0 %v1217_v45  ;;  %2010 = vmatprep.mubr.msk.bf16.mxu0 %vm2458_vm1, %v2457_v8  ;;  %v2182_v45 = vld [vmem:[%s2968_s13] sm:$0xff]  }
 0x4e6   : > { %2020 = vmatprep.subr.bf16.mxu0 %v2457_v8  ;;  %v1343_v48 = vpop.permute.xlu1 %1342 }
 0x4e7   : > { %2200 = vpow2.f32 %v1333_v46  ;;  %v1348_v51 = vsel %vm959_vm4, %v1343_v48, 0  ;;  %v2184_v46 = vld [vmem:[%s2996_s10] sm:$0xff]  }
 0x4e9   : > { %v2199_v47 = vpop.eup %2198 }
 0x4ea   : > { %v1204_v49 = vsel %vm899_vm3, %v2199_v47, 0.0  ;;  %v1207_v50 = vpack.c.bf16 %v2199_v47, %v2199_v47 }
 0x4eb   : > { %1205 = vadd.xlane.f32.xlu1 %v1204_v49 }
 0x4ec   : > { %2011 = vmatmul.mubr.msk.bf16.vlgmr.msra.gmra.mrb[20].mxu0 %vm899_vm3, %v1207_v50 }
 0x4ed   : > { %2021 = vmatpush3.bf16.msra.mxu0 %v1348_v51  ;;  %2022 = vmatprep.mubr.msk.bf16.mxu0 %vm2458_vm1, %v2457_v8 }
 0x4ee   : > { %2034 = vmatprep.subr.bf16.mxu0 %v2457_v8 }
 0x4f1   : > { %v2201_v52 = vpop.eup %2200 }
 0x4f2   : > { %v1335_v53 = vsel %vm899_vm3, %v2201_v52, 0.0  ;;  %v1338_v54 = vpack.c.bf16 %v2201_v52, %v2201_v52 }
 0x4f3   : > { %1336 = vadd.xlane.f32.xlu0 %v1335_v53  ;;  %v1895_v53 = vld [vmem:[#allocation13] ss:$0 sm:$0xff] }
 0x4f4   : > { %2023 = vmatmul.mubr.msk.bf16.vlgmr.msra.gmra.mrb[24].mxu0 %vm899_vm3, %v1338_v54 }
 0x4f5   : > { %2038 = vmatprep.mubr.msk.bf16.mxu0 %vm2458_vm1, %v2457_v8  ;;  %2035 = vmatpush3.bf16.msra.mxu0 %v2182_v45 }
 0x4f6   : > { %2036 = vmatprep.subr.bf16.mxu0 %v2457_v8 }
 0x4f7   : > { %953 = vadd.xlane.f32.xlu0 %v952_v55 }
 0x542   : > { %v997_v56 = vpop.f32.mrb[12].mxu0 }
 0x543   : > { %v1988_v57 = vpop.f32.mrb[13].mxu0 }
 0x544   : > { %v1000_v58 = vpop.f32.mrb[14].mxu0  ;;  %v2185_v57 = vld [vmem:[%s2996_s10 + $0x8] sm:$0xff]  }
 0x545   : > { %v1989_v59 = vpop.f32.mrb[15].mxu0  ;;  %v2186_v58 = vld [vmem:[%s2996_s10 + $0x10] sm:$0xff]  }
 0x546   : > { %v2187_v59 = vld [vmem:[%s2996_s10 + $0x18] sm:$0xff]  }
 0x570   : > { %v1075_v60 = vpop.xlane.xlu0 %1074 }
 0x578   : > { %v1206_v3 = vpop.xlane.xlu1 %1205 }
 0x580   : > { %v1337_v61 = vpop.xlane.xlu0 %1336 }
 0x584   : > { %v954_v62 = vpop.xlane.xlu0 %953 }
 0x585   : > { %2202 = vrcp.f32 %v954_v62  ;;  %v2190_v62 = vld [vmem:[%s2996_s10 + $0x30] sm:$0xff]  }
 0x586   : > { %2204 = vrcp.f32 %v1075_v60  ;;  %v2188_v60 = vld [vmem:[%s2996_s10 + $0x20] sm:$0xff]  }
 0x587   : > { %2206 = vrcp.f32 %v1206_v3 }
 0x588   : > { %2208 = vrcp.f32 %v1337_v61  ;;  %v2189_v61 = vld [vmem:[%s2996_s10 + $0x28] sm:$0xff]  }
 0x58f   : > { %v2203_v63 = vpop.eup %2202 }
 0x590   : > { %v1004_v1 = vmul.f32 %v2203_v63, %v997_v56  ;;  %v2205_v4 = vpop.eup %2204  ;;  %v2191_v63 = vld [vmem:[%s2996_s10 + $0x38] sm:$0xff]  }
 0x591   : > { %v2207_v12 = vpop.eup %2206 }
 0x592   : > { %v1005_v2 = vpack.c.bf16 %v1004_v1, %v1004_v1  ;;  %v2209_v21 = vpop.eup %2208  ;;  %v1896_v1 = vld [vmem:[#allocation14] ss:$0 sm:$0xff] }
 0x594   : > { %1007 = vst.msk [vmem:[#allocation5] sm:$0xf] %vm1006_vm5, %v1005_v2 }
 0x5b7   : > { %v1122_v5 = vpop.f32.mrb[16].mxu0 }
 0x5b8   : > { %v1129_v6 = vmul.f32 %v2205_v4, %v1122_v5  ;;  %v2000_v7 = vpop.f32.mrb[17].mxu0 }
 0x5b9   : > { %v1125_v9 = vpop.f32.mrb[18].mxu0 }
 0x5ba   : > { %v1911_v10 = vpack.c.bf16 %v1129_v6, %v1129_v6  ;;  %v2001_v11 = vpop.f32.mrb[19].mxu0 }
 0x5bc   : > { %1134 = vrot.lane.b32.xlu1 %v1911_v10, %s2462_s15  ;;  %s2997_s15 = sld [smem:[#allocation26_spill]] }
 0x5bf   : > { %v1253_v13 = vpop.f32.mrb[20].mxu0 }
 0x5c0   : > { %v1260_v15 = vmul.f32 %v2207_v12, %v1253_v13  ;;  %v2012_v16 = vpop.f32.mrb[21].mxu0 }
 0x5c1   : > { %v1256_v17 = vpop.f32.mrb[22].mxu0 }
 0x5c2   : > { %v1912_v19 = vpack.c.bf16 %v1260_v15, %v1260_v15  ;;  %v2013_v20 = vpop.f32.mrb[23].mxu0  ;;  %v1894_v51 = vld [vmem:[%s2997_s15] ss:$0 sm:$0xff] }
 0x5c4   : > { %1265 = vrot.lane.b32.xlu0 %v1912_v19, %s2463_s23 }
 0x5c7   : > { %v1384_v22 = vpop.f32.mrb[24].mxu0 }
 0x5c8   : > { %v1391_v23 = vmul.f32 %v2209_v21, %v1384_v22  ;;  %v2024_v24 = vpop.f32.mrb[25].mxu0 }
 0x5c9   : > { %v1387_v25 = vpop.f32.mrb[26].mxu0 }
 0x5ca   : > { %v1913_v26 = vpack.c.bf16 %v1391_v23, %v1391_v23  ;;  %v2025_v27 = vpop.f32.mrb[27].mxu0 }
 0x5cc   : > { %1396 = vrot.lane.b32.xlu1 %v1913_v26, %s2464_s1 }
 0x62e   : > { %v1135_v28 = vpop.permute.xlu1 %1134 }
 0x62f   : > { %1138 = vst.msk [vmem:[#allocation5] sm:$0xf] %vm1137_vm6, %v1135_v28 }
 0x636   : > { %v1266_v29 = vpop.permute.xlu0 %1265 }
 0x637   : > { %1269 = vst.msk [vmem:[#allocation5] sm:$0xf] %vm1268_vm7, %v1266_v29 }
 0x63e   : > { %v1397_v30 = vpop.permute.xlu1 %1396 }
 0x63f   : > { %1400 = vst.msk [vmem:[#allocation5] sm:$0xf] %vm1399_vm8, %v1397_v30 }
 0x646   : > { %v1401_v31 = vld [vmem:[#allocation5] sm:$0xf] }
 0x647   : > { %2031 = vmatmul.mubr.msk.bf16.vlgmr.msra.gmra.mrb[16].mxu1 %vm660_vm0, %v1401_v31 }
 0x648   : > { %2058 = vmatprep.mubr.msk.bf16.mxu1 %vm2458_vm1, %v2457_v8  ;;  %2043 = vmatpush3.bf16.msra.mxu1 %v2184_v46 }
 0x649   : > { %2044 = vmatprep.subr.bf16.mxu1 %v2457_v8 }
 0x64c   : > { %2045 = vmatpush3.bf16.msra.mxu1 %v2185_v57 }
 0x64d   : > { %2046 = vmatprep.subr.bf16.mxu1 %v2457_v8 }
 0x650   : > { %2047 = vmatpush3.bf16.msra.mxu1 %v2186_v58 }
 0x651   : > { %2048 = vmatprep.subr.bf16.mxu1 %v2457_v8 }
 0x654   : > { %2049 = vmatpush3.bf16.msra.mxu1 %v2187_v59 }
 0x655   : > { %2050 = vmatprep.subr.bf16.mxu1 %v2457_v8 }
 0x658   : > { %2051 = vmatpush3.bf16.msra.mxu1 %v2188_v60 }
 0x659   : > { %2052 = vmatprep.subr.bf16.mxu1 %v2457_v8 }
 0x65c   : > { %2053 = vmatpush3.bf16.msra.mxu1 %v2189_v61 }
 0x65d   : > { %2054 = vmatprep.subr.bf16.mxu1 %v2457_v8 }
 0x660   : > { %2055 = vmatpush3.bf16.msra.mxu1 %v2190_v62 }
 0x661   : > { %2056 = vmatprep.subr.bf16.mxu1 %v2457_v8  ;;  %v1900_v8 = vld [vmem:[#allocation16] ss:$0 sm:$0xff] }
 0x664   : > { %2057 = vmatpush3.bf16.msra.mxu1 %v2191_v63 }
 0x71a   : > { %v1463_v33 = vpop.f32.mrb[16].mxu1 }
 0x71b   : > { %v1464_v34 = vadd.f32 %v1890_v32, %v1463_v33  ;;  %v2032_v35 = vpop.f32.mrb[17].mxu1 }
 0x71c   : > { %v1466_v36 = vpop.f32.mrb[18].mxu1 }
 0x71d   : > { %v2891_v37 = vadd.f32 %v1464_v34, %v2768_v0  ;;  %v2033_v38 = vpop.f32.mrb[19].mxu1  ;;  %v2183_v0 = vld [vmem:[%s2968_s13 + $0x8] sm:$0xff]  }
 0x71e   : > { %2037 = vmatpush3.bf16.msra.mxu0 %v2183_v0 }
 0x71f   : > { %v1472_v39 = vsel %vm660_vm0, %v2891_v37, 0.0 }
 0x720   : > { %1473 = vadd.xlane.f32.xlu1 %v1472_v39 }
 0x7ad   : > { %v1474_v40 = vpop.xlane.xlu1 %1473 }
 0x7ae   : > { %v1476_v41 = vmul.f32 0.03125, %v1474_v40 }
 0x7b0   : > { %v1477_v42 = vsub.f32 %v2891_v37, %v1476_v41 }
 0x7b2   : > { %v1478_v43 = vmul.f32 %v1477_v42, %v1477_v42 }
 0x7b4   : > { %v1479_v44 = vsel %vm660_vm0, %v1478_v43, 0.0 }
 0x7b5   : > { %1480 = vadd.xlane.f32.xlu0 %v1479_v44 }
 0x842   : > { %v1481_v47 = vpop.xlane.xlu0 %1480 }
 0x843   : > { %v1482_v48 = vmul.f32 0.03125, %v1481_v47 }
 0x845   : > { %v1483_v49 = vadd.f32 1e-05, %v1482_v48 }
 0x847   : > { %2210 = vrsqrt.f32 %v1483_v49 }
 0x851   : > { %v2211_v50 = vpop.eup %2210 }
 0x852   : > { %v1485_v52 = vmul.f32 %v2211_v50, %v1477_v42 }
 0x854   : > { %v1492_v54 = vmul.f32 %v1894_v51, %v1485_v52 }
 0x856   : > { %v1499_v55 = vadd.f32 %v1895_v53, %v1492_v54 }
 0x858   : > { %v1500_v56 = vpack.c.bf16 %v1499_v55, %v1499_v55 }
 0x85a   : > { %2039 = vmatmul.mubr.msk.bf16.vlgmr.msra.gmra.mrb[28].mxu0 %vm660_vm0, %v1500_v56 }
 0x92d   : > { %v1561_v2 = vpop.f32.mrb[28].mxu0 }
 0x92e   : > { %v1562_v3 = vadd.f32 %v1896_v1, %v1561_v2  ;;  %v2040_v4 = vpop.f32.mrb[29].mxu0 }
 0x92f   : > { %v1564_v5 = vpop.f32.mrb[30].mxu0 }
 0x930   : > { %v1568_v6 = vmul.f32 0.044715, %v1562_v3  ;;  %v2041_v7 = vpop.f32.mrb[31].mxu0  ;;  %v1567_v14 = vmul.f32 0.5, %v1562_v3 }
 0x932   : > { %v1569_v9 = vmul.f32 %v1568_v6, %v1562_v3 }
 0x934   : > { %v1570_v10 = vmul.f32 %v1569_v9, %v1562_v3 }
 0x936   : > { %v1571_v11 = vadd.f32 %v1570_v10, %v1562_v3 }
 0x938   : > { %v1572_v12 = vmul.f32 0.7978846, %v1571_v11 }
 0x93a   : > { %2212 = vtanh.f32 %v1572_v12 }
 0x944   : > { %v2213_v13 = vpop.eup %2212 }
 0x945   : > { %v1574_v15 = vadd.f32 1.0, %v2213_v13 }
 0x947   : > { %v1575_v16 = vmul.f32 %v1574_v15, %v1567_v14 }
 0x949   : > { %v1576_v17 = vpack.c.bf16 %v1575_v16, %v1575_v16 }
 0x94b   : > { %2059 = vmatmul.mubr.bf16.vlgmr.msra.gmra.mrb[20].mxu1 %v1576_v17 }
 0xa1e   : > { %v1682_v18 = vpop.f32.mrb[20].mxu1 }
 0xa1f   : > { %v1683_v19 = vadd.f32 %v1900_v8, %v1682_v18  ;;  %v2060_v20 = vpop.f32.mrb[21].mxu1 }
 0xa20   : > { %v1685_v21 = vpop.f32.mrb[22].mxu1 }
 0xa21   : > { %v1688_v22 = vadd.f32 %v1683_v19, %v2891_v37  ;;  %v2061_v23 = vpop.f32.mrb[23].mxu1 }
 0xa23   : > { %1689 = vst.msk [vmem:[%s651_s27] sm:$0xff] %vm660_vm0, %v1688_v22 }
 0xa24 PF: > { %s2999_s19 = sld [smem:[#allocation21_spill]]  ;;  %s3000_s24 = smov %s2444_s25 }
 0xa25   : > { %s3001_s25 = smov %s3003_s18 }
 0xa2a   : > { %s31_s26 = sadd.s32 1, %s2999_s19  }
 0xa2b   : > { %p28_p7 = scmp.ge.s32.totalorder %s31_s26, 4  }
 0xa2d   :  { %30 = sbr.rel (!%p28_p7) target bundleno = 13 (0xd), region = 153 }
 0xa34   :  { %1715 = vsyncpa [#allocation7], 1 }
 0xa35   :  { %1717 = vsyncpa [#allocation7 + $0x1], 1 }
 0xa36   :  { %1718 = vsyncpa [#allocation9], 1 }
 0xa37   :  { %1719 = vsyncpa [#allocation12], 1 }
 0xa38   :  { %1720 = vsyncpa [#allocation15], 1 }

</bundles_post_ra>
